<compile_context>
chip_gen: v7x
topology: tpu7x:2x2x1
jax: 0.10.0
libtpu: 0.0.40
codegen_flags: <defaults>
</compile_context>

<pallas_src>
import functools

import jax
import jax.numpy as jnp
from jax import lax
from jax.experimental import pallas as pl
from jax.experimental.pallas import tpu as pltpu
import numpy as np


def _round_up(n, m):
    return ((n + m - 1) // m) * m


# -----------------------------------------------------------------------------
# Pallas kernel: hoisted input projection + LSTM recurrence + Linear + sigmoid.
# -----------------------------------------------------------------------------
def candle_lstm_kernel(x_ref, wih_ref, whh_ref, b_ref, wfc_ref, bfc_ref,
                       out_ref, gx_ref):
    # x_ref   : (T, BG, Dp)    f32   (time-major tile for this batch group)
    # wih_ref : (Dp, 4*Hp)     f32 or bf16
    # whh_ref : (Hp, 4*Hp)     f32 or bf16
    # b_ref   : (1, 4*Hp)      f32   (b_ih + b_hh, gate-padded)
    # wfc_ref : (Hp, O)        f32 or bf16
    # bfc_ref : (1, O)         f32
    # out_ref : (BG, O)        f32
    # gx_ref  : (T*BG, 4*Hp)   f32 scratch (hoisted input projection)
    T, BG, Dp = x_ref.shape
    Hp = whh_ref.shape[0]

    # ---- Input projection hoisted out of the recurrence: one big MXU matmul.
    #      (T*BG, Dp) @ (Dp, 4Hp) + bias, computed once, stored in VMEM.
    x2d = x_ref[...].reshape(T * BG, Dp).astype(wih_ref.dtype)
    gx_ref[...] = (
        jnp.dot(x2d, wih_ref[...], preferred_element_type=jnp.float32)
        + b_ref[...])

    # ---- Recurrence: h/c live in the fori_loop carry (vregs), not VMEM.
    def step(t, carry):
        h, c = carry
        row = pl.multiple_of(t * BG, BG)
        gates = gx_ref[pl.ds(row, BG), :] + jnp.dot(
            h.astype(whh_ref.dtype), whh_ref[...],
            preferred_element_type=jnp.float32)            # (BG, 4Hp) f32
        # Hp is a multiple of 128, so each gate slice is a full lane block.
        i_g = jax.nn.sigmoid(gates[:, 0 * Hp:1 * Hp])
        f_g = jax.nn.sigmoid(gates[:, 1 * Hp:2 * Hp])
        g_g = jnp.tanh(gates[:, 2 * Hp:3 * Hp])
        o_g = jax.nn.sigmoid(gates[:, 3 * Hp:4 * Hp])
        c = f_g * c + i_g * g_g
        h = o_g * jnp.tanh(c)
        return (h, c)

    h0 = jnp.zeros((BG, Hp), jnp.float32)
    c0 = jnp.zeros((BG, Hp), jnp.float32)
    h, _ = lax.fori_loop(0, T, step, (h0, c0), unroll=True)

    # ---- Final Linear on the last hidden state + sigmoid.
    logits = (jnp.dot(h.astype(wfc_ref.dtype), wfc_ref[...],
                      preferred_element_type=jnp.float32) + bfc_ref[...])
    out_ref[...] = jax.nn.sigmoid(logits)


def run_candle_lstm_kernel(x_tbd, wih_p, whh_p, b_p, wfc_p, bfc_p,
                           *, batch_group=8):
    T, Bp, Dp = x_tbd.shape
    Hp = whh_p.shape[0]
    O = wfc_p.shape[1]
    assert Bp % batch_group == 0
    n_groups = Bp // batch_group

    return pl.pallas_call(
        candle_lstm_kernel,
        out_shape=jax.ShapeDtypeStruct((Bp, O), jnp.float32),
        grid_spec=pltpu.PrefetchScalarGridSpec(
            num_scalar_prefetch=0,
            grid=(n_groups,),
            in_specs=[
                pl.BlockSpec((T, batch_group, Dp), lambda g: (0, g, 0)),
                pl.BlockSpec((Dp, 4 * Hp), lambda g: (0, 0)),
                pl.BlockSpec((Hp, 4 * Hp), lambda g: (0, 0)),
                pl.BlockSpec((1, 4 * Hp), lambda g: (0, 0)),
                pl.BlockSpec((Hp, O), lambda g: (0, 0)),
                pl.BlockSpec((1, O), lambda g: (0, 0)),
            ],
            out_specs=pl.BlockSpec((batch_group, O), lambda g: (g, 0)),
            scratch_shapes=[
                pltpu.VMEM((T * batch_group, 4 * Hp), jnp.float32),
            ],
        ),
        compiler_params=pltpu.CompilerParams(
            dimension_semantics=("parallel",),
            vmem_limit_bytes=32 * 1024 * 1024,
        ),
    )(x_tbd, wih_p, whh_p, b_p, wfc_p, bfc_p)


# -----------------------------------------------------------------------------
# Parameter padding to hardware tiles (exact for an LSTM: padded units stay 0).
# -----------------------------------------------------------------------------
def prepare_kernel_params(params, *, lane=128):
    w_ih_t = params["w_ih_t"]      # (D_in, 4H)
    w_hh_t = params["w_hh_t"]      # (H, 4H)
    b_g = params["b_gates"]        # (1, 4H)
    w_fc_t = params["w_fc_t"]      # (H, O)
    b_fc = params["b_fc"]          # (1, O)

    D_in = w_ih_t.shape[0]
    H = w_hh_t.shape[0]
    O = w_fc_t.shape[1]
    Hp = _round_up(H, lane)
    Dp = _round_up(D_in, lane)

    def pad_gate_cols(w, rows_to):
        # (rows, 4H) -> (rows_to, 4*Hp), padding each gate block separately.
        rows = w.shape[0]
        w4 = w.reshape(rows, 4, H)
        w4 = jnp.pad(w4, ((0, rows_to - rows), (0, 0), (0, Hp - H)))
        return w4.reshape(rows_to, 4 * Hp)

    return {
        "wih": pad_gate_cols(w_ih_t, Dp),              # (Dp, 4Hp)
        "whh": pad_gate_cols(w_hh_t, Hp),              # (Hp, 4Hp)
        "b": pad_gate_cols(b_g, 1),                    # (1, 4Hp)
        "wfc": jnp.pad(w_fc_t, ((0, Hp - H), (0, 0))),  # (Hp, O)
        "bfc": b_fc,                                   # (1, O)
        "D_in": D_in, "Dp": Dp, "H": H, "Hp": Hp, "O": O,
    }


# -----------------------------------------------------------------------------
# Module wrapper (glue in plain JAX: embedding gathers + concat + padding).
# -----------------------------------------------------------------------------
def candle_lstm_forward(params, x_candle, x_volume, x_day, x_dd, x_io,
                        *, mxu_dtype=jnp.float32, batch_group=8):
    emb_c = params["emb_candle"][x_candle]     # (B, T, E)
    emb_day = params["emb_day"][x_day]         # (B, T, Ed)
    emb_dd = params["emb_dd"][x_dd]            # (B, T, Edd)
    x = jnp.concatenate(
        [emb_c, x_volume[..., None], emb_day, emb_dd, x_io[..., None]],
        axis=-1).astype(jnp.float32)           # (B, T, D_in)
    B, T, D_in = x.shape

    kp = prepare_kernel_params(params)
    Dp = kp["Dp"]
    Bp = _round_up(max(B, batch_group), batch_group)

    # Pad batch (sublane) and feature (lane) dims with zeros; go time-major.
    x = jnp.pad(x, ((0, Bp - B), (0, 0), (0, Dp - D_in)))
    x_tbd = jnp.transpose(x, (1, 0, 2))        # (T, Bp, Dp) f32

    out = run_candle_lstm_kernel(
        x_tbd,
        kp["wih"].astype(mxu_dtype),
        kp["whh"].astype(mxu_dtype),
        kp["b"],                               # biases stay f32
        kp["wfc"].astype(mxu_dtype),
        kp["bfc"],
        batch_group=batch_group)
    return out[:B]


# Pure-JAX reference (matches torch.nn.LSTM batch_first + Linear + Sigmoid).
def candle_lstm_reference(params, x_candle, x_volume, x_day, x_dd, x_io):
    emb_c = params["emb_candle"][x_candle]
    emb_day = params["emb_day"][x_day]
    emb_dd = params["emb_dd"][x_dd]
    x = jnp.concatenate(
        [emb_c, x_volume[..., None], emb_day, emb_dd, x_io[..., None]],
        axis=-1).astype(jnp.float32)
    B, T, _ = x.shape
    H = params["w_hh_t"].shape[0]
    h = jnp.zeros((B, H), jnp.float32)
    c = jnp.zeros((B, H), jnp.float32)
    for t in range(T):
        gates = (x[:, t, :] @ params["w_ih_t"] + h @ params["w_hh_t"]
                 + params["b_gates"])
        i_g = jax.nn.sigmoid(gates[:, 0 * H:1 * H])
        f_g = jax.nn.sigmoid(gates[:, 1 * H:2 * H])
        g_g = jnp.tanh(gates[:, 2 * H:3 * H])
        o_g = jax.nn.sigmoid(gates[:, 3 * H:4 * H])
        c = f_g * c + i_g * g_g
        h = o_g * jnp.tanh(c)
    return jax.nn.sigmoid(h @ params["w_fc_t"] + params["b_fc"])


# -----------------------------------------------------------------------------
# Deterministic parameter init (synthetic; mirrors the nn.Module shapes).
# -----------------------------------------------------------------------------
def init_params(key, vocab_size, embedding_dim, day_vocab_size,
                day_embedding_dim, dd_vocab_size, dd_embedding_dim,
                hidden_dim, output_dim):
    input_dim = embedding_dim + 1 + day_embedding_dim + dd_embedding_dim + 1
    ks = jax.random.split(key, 8)
    s = 0.1
    emb_candle = s * jax.random.normal(ks[0], (vocab_size, embedding_dim), jnp.float32)
    emb_day = s * jax.random.normal(ks[1], (day_vocab_size, day_embedding_dim), jnp.float32)
    emb_dd = s * jax.random.normal(ks[2], (dd_vocab_size, dd_embedding_dim), jnp.float32)
    w_ih = s * jax.random.normal(ks[3], (4 * hidden_dim, input_dim), jnp.float32)
    w_hh = s * jax.random.normal(ks[4], (4 * hidden_dim, hidden_dim), jnp.float32)
    b_ih = s * jax.random.normal(ks[5], (4 * hidden_dim,), jnp.float32)
    b_hh = s * jax.random.normal(ks[6], (4 * hidden_dim,), jnp.float32)
    w_fc = s * jax.random.normal(ks[7], (output_dim, hidden_dim), jnp.float32)
    b_fc = jnp.zeros((output_dim,), jnp.float32)
    return {
        "emb_candle": emb_candle,
        "emb_day": emb_day,
        "emb_dd": emb_dd,
        "w_ih_t": w_ih.T,                                     # (D_in, 4H)
        "w_hh_t": w_hh.T,                                     # (H, 4H)
        "b_gates": (b_ih + b_hh).reshape(1, 4 * hidden_dim),  # (1, 4H)
        "w_fc_t": w_fc.T,                                     # (H, O)
        "b_fc": b_fc.reshape(1, output_dim),                  # (1, O)
    }


if __name__ == "__main__":
    # Small, forward-consistent shapes.
    vocab_size, embedding_dim = 16, 8
    day_vocab_size, day_embedding_dim = 7, 4
    dd_vocab_size, dd_embedding_dim = 5, 4
    hidden_dim, output_dim = 32, 1
    B, T = 2, 8

    key = jax.random.PRNGKey(0)
    kp, k1, k2, k3, k4, k5 = jax.random.split(key, 6)

    params = init_params(kp, vocab_size, embedding_dim, day_vocab_size,
                         day_embedding_dim, dd_vocab_size, dd_embedding_dim,
                         hidden_dim, output_dim)

    x_candle = jax.random.randint(k1, (B, T), 0, vocab_size, dtype=jnp.int32)
    x_day = jax.random.randint(k2, (B, T), 0, day_vocab_size, dtype=jnp.int32)
    x_dd = jax.random.randint(k3, (B, T), 0, dd_vocab_size, dtype=jnp.int32)
    x_volume = jax.random.normal(k4, (B, T), jnp.float32)
    x_io = jax.random.normal(k5, (B, T), jnp.float32)

    ref = candle_lstm_reference(params, x_candle, x_volume, x_day, x_dd, x_io)

    # f32 MXU operands (exact path, all generations).
    fwd_f32 = jax.jit(candle_lstm_forward)
    out = jax.block_until_ready(
        fwd_f32(params, x_candle, x_volume, x_day, x_dd, x_io))
    np.testing.assert_allclose(np.asarray(out), np.asarray(ref),
                               rtol=1e-4, atol=1e-4)

    # bf16 MXU operands (v6e/v7x fast path; gate math / state stay f32).
    fwd_bf16 = jax.jit(functools.partial(candle_lstm_forward,
                                         mxu_dtype=jnp.bfloat16))
    out_bf16 = jax.block_until_ready(
        fwd_bf16(params, x_candle, x_volume, x_day, x_dd, x_io))
    np.testing.assert_allclose(np.asarray(out_bf16), np.asarray(ref),
                               rtol=2e-2, atol=2e-2)

    print("KERNEL_OK")
</pallas_src>

<mosaic_0001>
module attributes {stable_mosaic.version = 11 : i64} {
  func.func @candle_lstm_kernel(%arg0: i32, %arg1: memref<8x8x128xf32, #tpu.memory_space<vmem>>, %arg2: memref<128x512xf32, #tpu.memory_space<vmem>>, %arg3: memref<128x512xf32, #tpu.memory_space<vmem>>, %arg4: memref<1x512xf32, #tpu.memory_space<vmem>>, %arg5: memref<128x1xf32, #tpu.memory_space<vmem>>, %arg6: memref<1x1xf32, #tpu.memory_space<vmem>>, %arg7: memref<8x1xf32, #tpu.memory_space<vmem>>, %arg8: memref<64x512xf32, #tpu.memory_space<vmem>>) attributes {dimension_semantics = [#tpu.dimension_semantics<parallel>], iteration_bounds = array<i64: 1>, scalar_prefetch = 0 : i64, scratch_operands = 1 : i64, tpu.core_type = #tpu.core_type<tc>, window_params = [{transform_indices = @transform_0, window_bounds = array<i64: 8, 8, 128>}, {pipeline_mode = #tpu.pipeline_mode<synchronous>, transform_indices = @transform_1, window_bounds = array<i64: 128, 512>}, {pipeline_mode = #tpu.pipeline_mode<synchronous>, transform_indices = @transform_2, window_bounds = array<i64: 128, 512>}, {pipeline_mode = #tpu.pipeline_mode<synchronous>, transform_indices = @transform_3, window_bounds = array<i64: 1, 512>}, {pipeline_mode = #tpu.pipeline_mode<synchronous>, transform_indices = @transform_4, window_bounds = array<i64: 128, 1>}, {pipeline_mode = #tpu.pipeline_mode<synchronous>, transform_indices = @transform_5, window_bounds = array<i64: 1, 1>}, {transform_indices = @transform_6, window_bounds = array<i64: 8, 1>}]} {
    %c0 = arith.constant 0 : index
    %c0_0 = arith.constant 0 : index
    %c0_1 = arith.constant 0 : index
    %0 = vector.load %arg1[%c0, %c0_0, %c0_1] : memref<8x8x128xf32, #tpu.memory_space<vmem>>, vector<8x8x128xf32>
    %1 = vector.shape_cast %0 : vector<8x8x128xf32> to vector<64x128xf32>
    %c0_2 = arith.constant 0 : index
    %c0_3 = arith.constant 0 : index
    %2 = vector.load %arg2[%c0_2, %c0_3] : memref<128x512xf32, #tpu.memory_space<vmem>>, vector<128x512xf32>
    %cst = arith.constant dense<0.000000e+00> : vector<64x512xf32>
    %3 = tpu.matmul %1, %2, %cst {dimension_numbers = #tpu.dot_dimension_numbers<[1], [0], [0], [1], [0, 0, 1, 1], [], []>} : vector<64x128xf32>, vector<128x512xf32>, vector<64x512xf32> -> vector<64x512xf32>
    %c0_4 = arith.constant 0 : index
    %c0_5 = arith.constant 0 : index
    %4 = vector.load %arg4[%c0_4, %c0_5] : memref<1x512xf32, #tpu.memory_space<vmem>>, vector<1x512xf32>
    %5 = vector.broadcast %4 : vector<1x512xf32> to vector<64x512xf32>
    %6 = arith.addf %3, %5 : vector<64x512xf32>
    %c0_6 = arith.constant 0 : index
    %c0_7 = arith.constant 0 : index
    %7 = vector.load %arg8[%c0_6, %c0_7] : memref<64x512xf32, #tpu.memory_space<vmem>>, vector<64x512xf32>
    tpu.vector_store %arg8[%c0_6, %c0_7], %6 {strides = array<i32>} : memref<64x512xf32, #tpu.memory_space<vmem>>, vector<64x512xf32>,
    %cst_8 = arith.constant 0.000000e+00 : f32
    %8 = vector.broadcast %cst_8 : f32 to vector<8x128xf32>
    %cst_9 = arith.constant 0.000000e+00 : f32
    %9 = vector.broadcast %cst_9 : f32 to vector<8x128xf32>
    %c0_i32 = arith.constant 0 : i32
    %c8_i32 = arith.constant 8 : i32
    %10 = arith.muli %c0_i32, %c8_i32 : i32
    %11 = tpu.assume_multiple %10, 8 : i32
    %12 = arith.index_cast %11 : i32 to index
    %c0_10 = arith.constant 0 : index
    %13 = vector.load %arg8[%12, %c0_10] : memref<64x512xf32, #tpu.memory_space<vmem>>, vector<8x512xf32>
    %c0_11 = arith.constant 0 : index
    %c0_12 = arith.constant 0 : index
    %14 = vector.load %arg3[%c0_11, %c0_12] : memref<128x512xf32, #tpu.memory_space<vmem>>, vector<128x512xf32>
    %cst_13 = arith.constant dense<0.000000e+00> : vector<8x512xf32>
    %15 = tpu.matmul %8, %14, %cst_13 {dimension_numbers = #tpu.dot_dimension_numbers<[1], [0], [0], [1], [0, 0, 1, 1], [], []>} : vector<8x128xf32>, vector<128x512xf32>, vector<8x512xf32> -> vector<8x512xf32>
    %16 = arith.addf %13, %15 : vector<8x512xf32>
    %17 = vector.extract_strided_slice %16 {offsets = [0, 0], sizes = [8, 128], strides = [1, 1]} : vector<8x512xf32> to vector<8x128xf32>
    %18 = arith.negf %17 : vector<8x128xf32>
    %19 = math.exp %18 : vector<8x128xf32>
    %cst_14 = arith.constant 1.000000e+00 : f32
    %20 = vector.broadcast %cst_14 : f32 to vector<8x128xf32>
    %21 = arith.addf %20, %19 : vector<8x128xf32>
    %22 = arith.divf %20, %21 : vector<8x128xf32>
    %23 = vector.extract_strided_slice %16 {offsets = [0, 128], sizes = [8, 128], strides = [1, 1]} : vector<8x512xf32> to vector<8x128xf32>
    %24 = arith.negf %23 : vector<8x128xf32>
    %25 = math.exp %24 : vector<8x128xf32>
    %cst_15 = arith.constant 1.000000e+00 : f32
    %26 = vector.broadcast %cst_15 : f32 to vector<8x128xf32>
    %27 = arith.addf %26, %25 : vector<8x128xf32>
    %28 = arith.divf %26, %27 : vector<8x128xf32>
    %29 = vector.extract_strided_slice %16 {offsets = [0, 256], sizes = [8, 128], strides = [1, 1]} : vector<8x512xf32> to vector<8x128xf32>
    %30 = math.tanh %29 : vector<8x128xf32>
    %31 = vector.extract_strided_slice %16 {offsets = [0, 384], sizes = [8, 128], strides = [1, 1]} : vector<8x512xf32> to vector<8x128xf32>
    %32 = arith.negf %31 : vector<8x128xf32>
    %33 = math.exp %32 : vector<8x128xf32>
    %cst_16 = arith.constant 1.000000e+00 : f32
    %34 = vector.broadcast %cst_16 : f32 to vector<8x128xf32>
    %35 = arith.addf %34, %33 : vector<8x128xf32>
    %36 = arith.divf %34, %35 : vector<8x128xf32>
    %37 = arith.mulf %28, %9 : vector<8x128xf32>
    %38 = arith.mulf %22, %30 : vector<8x128xf32>
    %39 = arith.addf %37, %38 : vector<8x128xf32>
    %40 = math.tanh %39 : vector<8x128xf32>
    %41 = arith.mulf %36, %40 : vector<8x128xf32>
    %c1_i32 = arith.constant 1 : i32
    %c8_i32_17 = arith.constant 8 : i32
    %42 = arith.muli %c1_i32, %c8_i32_17 : i32
    %43 = tpu.assume_multiple %42, 8 : i32
    %44 = arith.index_cast %43 : i32 to index
    %c0_18 = arith.constant 0 : index
    %45 = vector.load %arg8[%44, %c0_18] : memref<64x512xf32, #tpu.memory_space<vmem>>, vector<8x512xf32>
    %c0_19 = arith.constant 0 : index
    %c0_20 = arith.constant 0 : index
    %46 = vector.load %arg3[%c0_19, %c0_20] : memref<128x512xf32, #tpu.memory_space<vmem>>, vector<128x512xf32>
    %cst_21 = arith.constant dense<0.000000e+00> : vector<8x512xf32>
    %47 = tpu.matmul %41, %46, %cst_21 {dimension_numbers = #tpu.dot_dimension_numbers<[1], [0], [0], [1], [0, 0, 1, 1], [], []>} : vector<8x128xf32>, vector<128x512xf32>, vector<8x512xf32> -> vector<8x512xf32>
    %48 = arith.addf %45, %47 : vector<8x512xf32>
    %49 = vector.extract_strided_slice %48 {offsets = [0, 0], sizes = [8, 128], strides = [1, 1]} : vector<8x512xf32> to vector<8x128xf32>
    %50 = arith.negf %49 : vector<8x128xf32>
    %51 = math.exp %50 : vector<8x128xf32>
    %cst_22 = arith.constant 1.000000e+00 : f32
    %52 = vector.broadcast %cst_22 : f32 to vector<8x128xf32>
    %53 = arith.addf %52, %51 : vector<8x128xf32>
    %54 = arith.divf %52, %53 : vector<8x128xf32>
    %55 = vector.extract_strided_slice %48 {offsets = [0, 128], sizes = [8, 128], strides = [1, 1]} : vector<8x512xf32> to vector<8x128xf32>
    %56 = arith.negf %55 : vector<8x128xf32>
    %57 = math.exp %56 : vector<8x128xf32>
    %cst_23 = arith.constant 1.000000e+00 : f32
    %58 = vector.broadcast %cst_23 : f32 to vector<8x128xf32>
    %59 = arith.addf %58, %57 : vector<8x128xf32>
    %60 = arith.divf %58, %59 : vector<8x128xf32>
    %61 = vector.extract_strided_slice %48 {offsets = [0, 256], sizes = [8, 128], strides = [1, 1]} : vector<8x512xf32> to vector<8x128xf32>
    %62 = math.tanh %61 : vector<8x128xf32>
    %63 = vector.extract_strided_slice %48 {offsets = [0, 384], sizes = [8, 128], strides = [1, 1]} : vector<8x512xf32> to vector<8x128xf32>
    %64 = arith.negf %63 : vector<8x128xf32>
    %65 = math.exp %64 : vector<8x128xf32>
    %cst_24 = arith.constant 1.000000e+00 : f32
    %66 = vector.broadcast %cst_24 : f32 to vector<8x128xf32>
    %67 = arith.addf %66, %65 : vector<8x128xf32>
    %68 = arith.divf %66, %67 : vector<8x128xf32>
    %69 = arith.mulf %60, %39 : vector<8x128xf32>
    %70 = arith.mulf %54, %62 : vector<8x128xf32>
    %71 = arith.addf %69, %70 : vector<8x128xf32>
    %72 = math.tanh %71 : vector<8x128xf32>
    %73 = arith.mulf %68, %72 : vector<8x128xf32>
    %c2_i32 = arith.constant 2 : i32
    %c8_i32_25 = arith.constant 8 : i32
    %74 = arith.muli %c2_i32, %c8_i32_25 : i32
    %75 = tpu.assume_multiple %74, 8 : i32
    %76 = arith.index_cast %75 : i32 to index
    %c0_26 = arith.constant 0 : index
    %77 = vector.load %arg8[%76, %c0_26] : memref<64x512xf32, #tpu.memory_space<vmem>>, vector<8x512xf32>
    %c0_27 = arith.constant 0 : index
    %c0_28 = arith.constant 0 : index
    %78 = vector.load %arg3[%c0_27, %c0_28] : memref<128x512xf32, #tpu.memory_space<vmem>>, vector<128x512xf32>
    %cst_29 = arith.constant dense<0.000000e+00> : vector<8x512xf32>
    %79 = tpu.matmul %73, %78, %cst_29 {dimension_numbers = #tpu.dot_dimension_numbers<[1], [0], [0], [1], [0, 0, 1, 1], [], []>} : vector<8x128xf32>, vector<128x512xf32>, vector<8x512xf32> -> vector<8x512xf32>
    %80 = arith.addf %77, %79 : vector<8x512xf32>
    %81 = vector.extract_strided_slice %80 {offsets = [0, 0], sizes = [8, 128], strides = [1, 1]} : vector<8x512xf32> to vector<8x128xf32>
    %82 = arith.negf %81 : vector<8x128xf32>
    %83 = math.exp %82 : vector<8x128xf32>
    %cst_30 = arith.constant 1.000000e+00 : f32
    %84 = vector.broadcast %cst_30 : f32 to vector<8x128xf32>
    %85 = arith.addf %84, %83 : vector<8x128xf32>
    %86 = arith.divf %84, %85 : vector<8x128xf32>
    %87 = vector.extract_strided_slice %80 {offsets = [0, 128], sizes = [8, 128], strides = [1, 1]} : vector<8x512xf32> to vector<8x128xf32>
    %88 = arith.negf %87 : vector<8x128xf32>
    %89 = math.exp %88 : vector<8x128xf32>
    %cst_31 = arith.constant 1.000000e+00 : f32
    %90 = vector.broadcast %cst_31 : f32 to vector<8x128xf32>
    %91 = arith.addf %90, %89 : vector<8x128xf32>
    %92 = arith.divf %90, %91 : vector<8x128xf32>
    %93 = vector.extract_strided_slice %80 {offsets = [0, 256], sizes = [8, 128], strides = [1, 1]} : vector<8x512xf32> to vector<8x128xf32>
    %94 = math.tanh %93 : vector<8x128xf32>
    %95 = vector.extract_strided_slice %80 {offsets = [0, 384], sizes = [8, 128], strides = [1, 1]} : vector<8x512xf32> to vector<8x128xf32>
    %96 = arith.negf %95 : vector<8x128xf32>
    %97 = math.exp %96 : vector<8x128xf32>
    %cst_32 = arith.constant 1.000000e+00 : f32
    %98 = vector.broadcast %cst_32 : f32 to vector<8x128xf32>
    %99 = arith.addf %98, %97 : vector<8x128xf32>
    %100 = arith.divf %98, %99 : vector<8x128xf32>
    %101 = arith.mulf %92, %71 : vector<8x128xf32>
    %102 = arith.mulf %86, %94 : vector<8x128xf32>
    %103 = arith.addf %101, %102 : vector<8x128xf32>
    %104 = math.tanh %103 : vector<8x128xf32>
    %105 = arith.mulf %100, %104 : vector<8x128xf32>
    %c3_i32 = arith.constant 3 : i32
    %c8_i32_33 = arith.constant 8 : i32
    %106 = arith.muli %c3_i32, %c8_i32_33 : i32
    %107 = tpu.assume_multiple %106, 8 : i32
    %108 = arith.index_cast %107 : i32 to index
    %c0_34 = arith.constant 0 : index
    %109 = vector.load %arg8[%108, %c0_34] : memref<64x512xf32, #tpu.memory_space<vmem>>, vector<8x512xf32>
    %c0_35 = arith.constant 0 : index
    %c0_36 = arith.constant 0 : index
    %110 = vector.load %arg3[%c0_35, %c0_36] : memref<128x512xf32, #tpu.memory_space<vmem>>, vector<128x512xf32>
    %cst_37 = arith.constant dense<0.000000e+00> : vector<8x512xf32>
    %111 = tpu.matmul %105, %110, %cst_37 {dimension_numbers = #tpu.dot_dimension_numbers<[1], [0], [0], [1], [0, 0, 1, 1], [], []>} : vector<8x128xf32>, vector<128x512xf32>, vector<8x512xf32> -> vector<8x512xf32>
    %112 = arith.addf %109, %111 : vector<8x512xf32>
    %113 = vector.extract_strided_slice %112 {offsets = [0, 0], sizes = [8, 128], strides = [1, 1]} : vector<8x512xf32> to vector<8x128xf32>
    %114 = arith.negf %113 : vector<8x128xf32>
    %115 = math.exp %114 : vector<8x128xf32>
    %cst_38 = arith.constant 1.000000e+00 : f32
    %116 = vector.broadcast %cst_38 : f32 to vector<8x128xf32>
    %117 = arith.addf %116, %115 : vector<8x128xf32>
    %118 = arith.divf %116, %117 : vector<8x128xf32>
    %119 = vector.extract_strided_slice %112 {offsets = [0, 128], sizes = [8, 128], strides = [1, 1]} : vector<8x512xf32> to vector<8x128xf32>
    %120 = arith.negf %119 : vector<8x128xf32>
    %121 = math.exp %120 : vector<8x128xf32>
    %cst_39 = arith.constant 1.000000e+00 : f32
    %122 = vector.broadcast %cst_39 : f32 to vector<8x128xf32>
    %123 = arith.addf %122, %121 : vector<8x128xf32>
    %124 = arith.divf %122, %123 : vector<8x128xf32>
    %125 = vector.extract_strided_slice %112 {offsets = [0, 256], sizes = [8, 128], strides = [1, 1]} : vector<8x512xf32> to vector<8x128xf32>
    %126 = math.tanh %125 : vector<8x128xf32>
    %127 = vector.extract_strided_slice %112 {offsets = [0, 384], sizes = [8, 128], strides = [1, 1]} : vector<8x512xf32> to vector<8x128xf32>
    %128 = arith.negf %127 : vector<8x128xf32>
    %129 = math.exp %128 : vector<8x128xf32>
    %cst_40 = arith.constant 1.000000e+00 : f32
    %130 = vector.broadcast %cst_40 : f32 to vector<8x128xf32>
    %131 = arith.addf %130, %129 : vector<8x128xf32>
    %132 = arith.divf %130, %131 : vector<8x128xf32>
    %133 = arith.mulf %124, %103 : vector<8x128xf32>
    %134 = arith.mulf %118, %126 : vector<8x128xf32>
    %135 = arith.addf %133, %134 : vector<8x128xf32>
    %136 = math.tanh %135 : vector<8x128xf32>
    %137 = arith.mulf %132, %136 : vector<8x128xf32>
    %c4_i32 = arith.constant 4 : i32
    %c8_i32_41 = arith.constant 8 : i32
    %138 = arith.muli %c4_i32, %c8_i32_41 : i32
    %139 = tpu.assume_multiple %138, 8 : i32
    %140 = arith.index_cast %139 : i32 to index
    %c0_42 = arith.constant 0 : index
    %141 = vector.load %arg8[%140, %c0_42] : memref<64x512xf32, #tpu.memory_space<vmem>>, vector<8x512xf32>
    %c0_43 = arith.constant 0 : index
    %c0_44 = arith.constant 0 : index
    %142 = vector.load %arg3[%c0_43, %c0_44] : memref<128x512xf32, #tpu.memory_space<vmem>>, vector<128x512xf32>
    %cst_45 = arith.constant dense<0.000000e+00> : vector<8x512xf32>
    %143 = tpu.matmul %137, %142, %cst_45 {dimension_numbers = #tpu.dot_dimension_numbers<[1], [0], [0], [1], [0, 0, 1, 1], [], []>} : vector<8x128xf32>, vector<128x512xf32>, vector<8x512xf32> -> vector<8x512xf32>
    %144 = arith.addf %141, %143 : vector<8x512xf32>
    %145 = vector.extract_strided_slice %144 {offsets = [0, 0], sizes = [8, 128], strides = [1, 1]} : vector<8x512xf32> to vector<8x128xf32>
    %146 = arith.negf %145 : vector<8x128xf32>
    %147 = math.exp %146 : vector<8x128xf32>
    %cst_46 = arith.constant 1.000000e+00 : f32
    %148 = vector.broadcast %cst_46 : f32 to vector<8x128xf32>
    %149 = arith.addf %148, %147 : vector<8x128xf32>
    %150 = arith.divf %148, %149 : vector<8x128xf32>
    %151 = vector.extract_strided_slice %144 {offsets = [0, 128], sizes = [8, 128], strides = [1, 1]} : vector<8x512xf32> to vector<8x128xf32>
    %152 = arith.negf %151 : vector<8x128xf32>
    %153 = math.exp %152 : vector<8x128xf32>
    %cst_47 = arith.constant 1.000000e+00 : f32
    %154 = vector.broadcast %cst_47 : f32 to vector<8x128xf32>
    %155 = arith.addf %154, %153 : vector<8x128xf32>
    %156 = arith.divf %154, %155 : vector<8x128xf32>
    %157 = vector.extract_strided_slice %144 {offsets = [0, 256], sizes = [8, 128], strides = [1, 1]} : vector<8x512xf32> to vector<8x128xf32>
    %158 = math.tanh %157 : vector<8x128xf32>
    %159 = vector.extract_strided_slice %144 {offsets = [0, 384], sizes = [8, 128], strides = [1, 1]} : vector<8x512xf32> to vector<8x128xf32>
    %160 = arith.negf %159 : vector<8x128xf32>
    %161 = math.exp %160 : vector<8x128xf32>
    %cst_48 = arith.constant 1.000000e+00 : f32
    %162 = vector.broadcast %cst_48 : f32 to vector<8x128xf32>
    %163 = arith.addf %162, %161 : vector<8x128xf32>
    %164 = arith.divf %162, %163 : vector<8x128xf32>
    %165 = arith.mulf %156, %135 : vector<8x128xf32>
    %166 = arith.mulf %150, %158 : vector<8x128xf32>
    %167 = arith.addf %165, %166 : vector<8x128xf32>
    %168 = math.tanh %167 : vector<8x128xf32>
    %169 = arith.mulf %164, %168 : vector<8x128xf32>
    %c5_i32 = arith.constant 5 : i32
    %c8_i32_49 = arith.constant 8 : i32
    %170 = arith.muli %c5_i32, %c8_i32_49 : i32
    %171 = tpu.assume_multiple %170, 8 : i32
    %172 = arith.index_cast %171 : i32 to index
    %c0_50 = arith.constant 0 : index
    %173 = vector.load %arg8[%172, %c0_50] : memref<64x512xf32, #tpu.memory_space<vmem>>, vector<8x512xf32>
    %c0_51 = arith.constant 0 : index
    %c0_52 = arith.constant 0 : index
    %174 = vector.load %arg3[%c0_51, %c0_52] : memref<128x512xf32, #tpu.memory_space<vmem>>, vector<128x512xf32>
    %cst_53 = arith.constant dense<0.000000e+00> : vector<8x512xf32>
    %175 = tpu.matmul %169, %174, %cst_53 {dimension_numbers = #tpu.dot_dimension_numbers<[1], [0], [0], [1], [0, 0, 1, 1], [], []>} : vector<8x128xf32>, vector<128x512xf32>, vector<8x512xf32> -> vector<8x512xf32>
    %176 = arith.addf %173, %175 : vector<8x512xf32>
    %177 = vector.extract_strided_slice %176 {offsets = [0, 0], sizes = [8, 128], strides = [1, 1]} : vector<8x512xf32> to vector<8x128xf32>
    %178 = arith.negf %177 : vector<8x128xf32>
    %179 = math.exp %178 : vector<8x128xf32>
    %cst_54 = arith.constant 1.000000e+00 : f32
    %180 = vector.broadcast %cst_54 : f32 to vector<8x128xf32>
    %181 = arith.addf %180, %179 : vector<8x128xf32>
    %182 = arith.divf %180, %181 : vector<8x128xf32>
    %183 = vector.extract_strided_slice %176 {offsets = [0, 128], sizes = [8, 128], strides = [1, 1]} : vector<8x512xf32> to vector<8x128xf32>
    %184 = arith.negf %183 : vector<8x128xf32>
    %185 = math.exp %184 : vector<8x128xf32>
    %cst_55 = arith.constant 1.000000e+00 : f32
    %186 = vector.broadcast %cst_55 : f32 to vector<8x128xf32>
    %187 = arith.addf %186, %185 : vector<8x128xf32>
    %188 = arith.divf %186, %187 : vector<8x128xf32>
    %189 = vector.extract_strided_slice %176 {offsets = [0, 256], sizes = [8, 128], strides = [1, 1]} : vector<8x512xf32> to vector<8x128xf32>
    %190 = math.tanh %189 : vector<8x128xf32>
    %191 = vector.extract_strided_slice %176 {offsets = [0, 384], sizes = [8, 128], strides = [1, 1]} : vector<8x512xf32> to vector<8x128xf32>
    %192 = arith.negf %191 : vector<8x128xf32>
    %193 = math.exp %192 : vector<8x128xf32>
    %cst_56 = arith.constant 1.000000e+00 : f32
    %194 = vector.broadcast %cst_56 : f32 to vector<8x128xf32>
    %195 = arith.addf %194, %193 : vector<8x128xf32>
    %196 = arith.divf %194, %195 : vector<8x128xf32>
    %197 = arith.mulf %188, %167 : vector<8x128xf32>
    %198 = arith.mulf %182, %190 : vector<8x128xf32>
    %199 = arith.addf %197, %198 : vector<8x128xf32>
    %200 = math.tanh %199 : vector<8x128xf32>
    %201 = arith.mulf %196, %200 : vector<8x128xf32>
    %c6_i32 = arith.constant 6 : i32
    %c8_i32_57 = arith.constant 8 : i32
    %202 = arith.muli %c6_i32, %c8_i32_57 : i32
    %203 = tpu.assume_multiple %202, 8 : i32
    %204 = arith.index_cast %203 : i32 to index
    %c0_58 = arith.constant 0 : index
    %205 = vector.load %arg8[%204, %c0_58] : memref<64x512xf32, #tpu.memory_space<vmem>>, vector<8x512xf32>
    %c0_59 = arith.constant 0 : index
    %c0_60 = arith.constant 0 : index
    %206 = vector.load %arg3[%c0_59, %c0_60] : memref<128x512xf32, #tpu.memory_space<vmem>>, vector<128x512xf32>
    %cst_61 = arith.constant dense<0.000000e+00> : vector<8x512xf32>
    %207 = tpu.matmul %201, %206, %cst_61 {dimension_numbers = #tpu.dot_dimension_numbers<[1], [0], [0], [1], [0, 0, 1, 1], [], []>} : vector<8x128xf32>, vector<128x512xf32>, vector<8x512xf32> -> vector<8x512xf32>
    %208 = arith.addf %205, %207 : vector<8x512xf32>
    %209 = vector.extract_strided_slice %208 {offsets = [0, 0], sizes = [8, 128], strides = [1, 1]} : vector<8x512xf32> to vector<8x128xf32>
    %210 = arith.negf %209 : vector<8x128xf32>
    %211 = math.exp %210 : vector<8x128xf32>
    %cst_62 = arith.constant 1.000000e+00 : f32
    %212 = vector.broadcast %cst_62 : f32 to vector<8x128xf32>
    %213 = arith.addf %212, %211 : vector<8x128xf32>
    %214 = arith.divf %212, %213 : vector<8x128xf32>
    %215 = vector.extract_strided_slice %208 {offsets = [0, 128], sizes = [8, 128], strides = [1, 1]} : vector<8x512xf32> to vector<8x128xf32>
    %216 = arith.negf %215 : vector<8x128xf32>
    %217 = math.exp %216 : vector<8x128xf32>
    %cst_63 = arith.constant 1.000000e+00 : f32
    %218 = vector.broadcast %cst_63 : f32 to vector<8x128xf32>
    %219 = arith.addf %218, %217 : vector<8x128xf32>
    %220 = arith.divf %218, %219 : vector<8x128xf32>
    %221 = vector.extract_strided_slice %208 {offsets = [0, 256], sizes = [8, 128], strides = [1, 1]} : vector<8x512xf32> to vector<8x128xf32>
    %222 = math.tanh %221 : vector<8x128xf32>
    %223 = vector.extract_strided_slice %208 {offsets = [0, 384], sizes = [8, 128], strides = [1, 1]} : vector<8x512xf32> to vector<8x128xf32>
    %224 = arith.negf %223 : vector<8x128xf32>
    %225 = math.exp %224 : vector<8x128xf32>
    %cst_64 = arith.constant 1.000000e+00 : f32
    %226 = vector.broadcast %cst_64 : f32 to vector<8x128xf32>
    %227 = arith.addf %226, %225 : vector<8x128xf32>
    %228 = arith.divf %226, %227 : vector<8x128xf32>
    %229 = arith.mulf %220, %199 : vector<8x128xf32>
    %230 = arith.mulf %214, %222 : vector<8x128xf32>
    %231 = arith.addf %229, %230 : vector<8x128xf32>
    %232 = math.tanh %231 : vector<8x128xf32>
    %233 = arith.mulf %228, %232 : vector<8x128xf32>
    %c7_i32 = arith.constant 7 : i32
    %c8_i32_65 = arith.constant 8 : i32
    %234 = arith.muli %c7_i32, %c8_i32_65 : i32
    %235 = tpu.assume_multiple %234, 8 : i32
    %236 = arith.index_cast %235 : i32 to index
    %c0_66 = arith.constant 0 : index
    %237 = vector.load %arg8[%236, %c0_66] : memref<64x512xf32, #tpu.memory_space<vmem>>, vector<8x512xf32>
    %c0_67 = arith.constant 0 : index
    %c0_68 = arith.constant 0 : index
    %238 = vector.load %arg3[%c0_67, %c0_68] : memref<128x512xf32, #tpu.memory_space<vmem>>, vector<128x512xf32>
    %cst_69 = arith.constant dense<0.000000e+00> : vector<8x512xf32>
    %239 = tpu.matmul %233, %238, %cst_69 {dimension_numbers = #tpu.dot_dimension_numbers<[1], [0], [0], [1], [0, 0, 1, 1], [], []>} : vector<8x128xf32>, vector<128x512xf32>, vector<8x512xf32> -> vector<8x512xf32>
    %240 = arith.addf %237, %239 : vector<8x512xf32>
    %241 = vector.extract_strided_slice %240 {offsets = [0, 0], sizes = [8, 128], strides = [1, 1]} : vector<8x512xf32> to vector<8x128xf32>
    %242 = arith.negf %241 : vector<8x128xf32>
    %243 = math.exp %242 : vector<8x128xf32>
    %cst_70 = arith.constant 1.000000e+00 : f32
    %244 = vector.broadcast %cst_70 : f32 to vector<8x128xf32>
    %245 = arith.addf %244, %243 : vector<8x128xf32>
    %246 = arith.divf %244, %245 : vector<8x128xf32>
    %247 = vector.extract_strided_slice %240 {offsets = [0, 128], sizes = [8, 128], strides = [1, 1]} : vector<8x512xf32> to vector<8x128xf32>
    %248 = arith.negf %247 : vector<8x128xf32>
    %249 = math.exp %248 : vector<8x128xf32>
    %cst_71 = arith.constant 1.000000e+00 : f32
    %250 = vector.broadcast %cst_71 : f32 to vector<8x128xf32>
    %251 = arith.addf %250, %249 : vector<8x128xf32>
    %252 = arith.divf %250, %251 : vector<8x128xf32>
    %253 = vector.extract_strided_slice %240 {offsets = [0, 256], sizes = [8, 128], strides = [1, 1]} : vector<8x512xf32> to vector<8x128xf32>
    %254 = math.tanh %253 : vector<8x128xf32>
    %255 = vector.extract_strided_slice %240 {offsets = [0, 384], sizes = [8, 128], strides = [1, 1]} : vector<8x512xf32> to vector<8x128xf32>
    %256 = arith.negf %255 : vector<8x128xf32>
    %257 = math.exp %256 : vector<8x128xf32>
    %cst_72 = arith.constant 1.000000e+00 : f32
    %258 = vector.broadcast %cst_72 : f32 to vector<8x128xf32>
    %259 = arith.addf %258, %257 : vector<8x128xf32>
    %260 = arith.divf %258, %259 : vector<8x128xf32>
    %261 = arith.mulf %252, %231 : vector<8x128xf32>
    %262 = arith.mulf %246, %254 : vector<8x128xf32>
    %263 = arith.addf %261, %262 : vector<8x128xf32>
    %264 = math.tanh %263 : vector<8x128xf32>
    %265 = arith.mulf %260, %264 : vector<8x128xf32>
    %c8_i32_73 = arith.constant 8 : i32
    %c0_74 = arith.constant 0 : index
    %c0_75 = arith.constant 0 : index
    %266 = vector.load %arg5[%c0_74, %c0_75] : memref<128x1xf32, #tpu.memory_space<vmem>>, vector<128x1xf32>
    %cst_76 = arith.constant dense<0.000000e+00> : vector<8x1xf32>
    %267 = tpu.matmul %265, %266, %cst_76 {dimension_numbers = #tpu.dot_dimension_numbers<[1], [0], [0], [1], [0, 0, 1, 1], [], []>} : vector<8x128xf32>, vector<128x1xf32>, vector<8x1xf32> -> vector<8x1xf32>
    %c0_77 = arith.constant 0 : index
    %c0_78 = arith.constant 0 : index
    %268 = vector.load %arg6[%c0_77, %c0_78] : memref<1x1xf32, #tpu.memory_space<vmem>>, vector<1x1xf32>
    %269 = vector.broadcast %268 : vector<1x1xf32> to vector<8x1xf32>
    %270 = arith.addf %267, %269 : vector<8x1xf32>
    %271 = arith.negf %270 : vector<8x1xf32>
    %272 = math.exp %271 : vector<8x1xf32>
    %cst_79 = arith.constant 1.000000e+00 : f32
    %273 = vector.broadcast %cst_79 : f32 to vector<8x1xf32>
    %274 = arith.addf %273, %272 : vector<8x1xf32>
    %275 = arith.divf %273, %274 : vector<8x1xf32>
    %c0_80 = arith.constant 0 : index
    %c0_81 = arith.constant 0 : index
    %276 = vector.load %arg7[%c0_80, %c0_81] : memref<8x1xf32, #tpu.memory_space<vmem>>, vector<8x1xf32>
    tpu.vector_store %arg7[%c0_80, %c0_81], %275 {strides = array<i32>} : memref<8x1xf32, #tpu.memory_space<vmem>>, vector<8x1xf32>,
    return
  }
  func.func @transform_0(%arg0: i32) -> (i32, i32, i32) {
    %c0_i32 = arith.constant 0 : i32
    %c0_i32_0 = arith.constant 0 : i32
    %c0_i32_1 = arith.constant 0 : i32
    return %c0_i32, %arg0, %c0_i32_0 : i32, i32, i32
  }
  func.func @transform_1(%arg0: i32) -> (i32, i32) {
    %c0_i32 = arith.constant 0 : i32
    %c0_i32_0 = arith.constant 0 : i32
    %c0_i32_1 = arith.constant 0 : i32
    return %c0_i32, %c0_i32_0 : i32, i32
  }
  func.func @transform_2(%arg0: i32) -> (i32, i32) {
    %c0_i32 = arith.constant 0 : i32
    %c0_i32_0 = arith.constant 0 : i32
    %c0_i32_1 = arith.constant 0 : i32
    return %c0_i32, %c0_i32_0 : i32, i32
  }
  func.func @transform_3(%arg0: i32) -> (i32, i32) {
    %c0_i32 = arith.constant 0 : i32
    %c0_i32_0 = arith.constant 0 : i32
    %c0_i32_1 = arith.constant 0 : i32
    return %c0_i32, %c0_i32_0 : i32, i32
  }
  func.func @transform_4(%arg0: i32) -> (i32, i32) {
    %c0_i32 = arith.constant 0 : i32
    %c0_i32_0 = arith.constant 0 : i32
    %c0_i32_1 = arith.constant 0 : i32
    return %c0_i32, %c0_i32_0 : i32, i32
  }
  func.func @transform_5(%arg0: i32) -> (i32, i32) {
    %c0_i32 = arith.constant 0 : i32
    %c0_i32_0 = arith.constant 0 : i32
    %c0_i32_1 = arith.constant 0 : i32
    return %c0_i32, %c0_i32_0 : i32, i32
  }
  func.func @transform_6(%arg0: i32) -> (i32, i32) {
    %c0_i32 = arith.constant 0 : i32
    %c0_i32_0 = arith.constant 0 : i32
    return %arg0, %c0_i32 : i32, i32
  }
}

</mosaic_0001>

<bundles_post_ra>
// kernel: candle_lstm_forward.1
= control target key start
LH: loop header
LB: loop body
LE: loop exit
PB: predicated region body
PF: predicated region fallthrough
CT: control target
= control target key end

     0   :  { %v2846_v3 = vmov 0.0   ;;  %vm2848_vm0 = vmmov 0   ;;  %vm1956_vm1 = vcmask 7168   ;;  %s3772_s1 = inlined_call_operand.vmem [shape: f32[128,512], index: 1, kind: input, shape index: {}]   ;;  %s3773_s2 = inlined_call_operand.vmem [shape: f32[128,512], index: 2, kind: input, shape index: {}]   ;;  %s3774_s0 = inlined_call_operand.vmem [shape: f32[8,8,128], index: 0, kind: input, shape index: {}]   ;;  %s3775_s3 = inlined_call_operand.vmem [shape: f32[1,512], index: 3, kind: input, shape index: {}]   ;;  %s3776_s4 = inlined_call_operand.vmem [shape: f32[128,1], index: 4, kind: input, shape index: {}]   ;;  %s3777_s5 = inlined_call_operand.<no memory space> [shape: f32[1,1], index: 5, kind: input, shape index: {}]   ;;  %s3778_s6 = inlined_call_operand.vmem [shape: f32[8,1], index: 6, kind: output, shape index: {}]  }
   0x1   :  { %v34_v0 = vld [vmem:[%s3772_s1 + $0x8] sm:$0xff]  ;;  %v36_v2 = vld [vmem:[%s3772_s1 + $0x18] sm:$0xff]  ;;  %183 = vmatprep.mubr.f32.mxu0 %v2846_v3  ;;  %296 = vmatprep.mubr.f32.mxu1 %v2846_v3  ;;  %v33_v6 = vld [vmem:[%s3772_s1] sm:$0xff] }
   0x2   :  { %v38_v1 = vld [vmem:[%s3772_s1 + $0x28] sm:$0xff]  ;;  %v40_v5 = vld [vmem:[%s3772_s1 + $0x38] sm:$0xff]  ;;  %v37_v7 = vld [vmem:[%s3772_s1 + $0x20] sm:$0xff] }
   0x3   :  { %v2047_v4 = vpack.c.bf16 %v38_v1, %v34_v0  ;;  %v2079_v8 = vpack.c.bf16 %v40_v5, %v36_v2  ;;  %v2049_v9 = vpack.c.bf16 %v37_v7, %v33_v6  ;;  %v35_v10 = vld [vmem:[%s3772_s1 + $0x10] sm:$0xff]  ;;  %v42_v12 = vld [vmem:[%s3772_s1 + $0x48] sm:$0xff]  ;;  %v44_v15 = vld [vmem:[%s3772_s1 + $0x58] sm:$0xff] }
   0x4   :  { %v39_v11 = vld [vmem:[%s3772_s1 + $0x30] sm:$0xff]  ;;  %v46_v14 = vld [vmem:[%s3772_s1 + $0x68] sm:$0xff]  ;;  %v48_v16 = vld [vmem:[%s3772_s1 + $0x78] sm:$0xff] }
   0x5   :  { %2048 = vmatprep.subr.bf16.mxu0 %v2047_v4  ;;  %v2081_v13 = vpack.c.bf16 %v39_v11, %v35_v10  ;;  %2080 = vmatprep.subr.bf16.mxu1 %v2079_v8  ;;  %v2051_v17 = vpack.c.bf16 %v46_v14, %v42_v12  ;;  %v2083_v18 = vpack.c.bf16 %v48_v16, %v44_v15  ;;  %v41_v19 = vld [vmem:[%s3772_s1 + $0x40] sm:$0xff]  ;;  %v43_v21 = vld [vmem:[%s3772_s1 + $0x50] sm:$0xff]  ;;  %v50_v24 = vld [vmem:[%s3772_s1 + $0x88] sm:$0xff] }
   0x6   :  { %2050 = vmatpush1.bf16.msra.mxu0 %v2049_v9  ;;  %v45_v20 = vld [vmem:[%s3772_s1 + $0x60] sm:$0xff]  ;;  %v47_v23 = vld [vmem:[%s3772_s1 + $0x70] sm:$0xff]  ;;  %v54_v25 = vld [vmem:[%s3772_s1 + $0xa8] sm:$0xff] }
   0x7   :  { %2082 = vmatpush1.bf16.msra.mxu1 %v2081_v13  ;;  %v2053_v22 = vpack.c.bf16 %v45_v20, %v41_v19  ;;  %2052 = vmatprep.subr.bf16.mxu0 %v2051_v17  ;;  %v2085_v26 = vpack.c.bf16 %v47_v23, %v43_v21  ;;  %v2055_v27 = vpack.c.bf16 %v54_v25, %v50_v24  ;;  %v52_v28 = vld [vmem:[%s3772_s1 + $0x98] sm:$0xff]  ;;  %v49_v30 = vld [vmem:[%s3772_s1 + $0x80] sm:$0xff]  ;;  %v51_v33 = vld [vmem:[%s3772_s1 + $0x90] sm:$0xff] }
   0x8   :  { %2084 = vmatprep.subr.bf16.mxu1 %v2083_v18  ;;  %v56_v29 = vld [vmem:[%s3772_s1 + $0xb8] sm:$0xff]  ;;  %v53_v32 = vld [vmem:[%s3772_s1 + $0xa0] sm:$0xff]  ;;  %v55_v34 = vld [vmem:[%s3772_s1 + $0xb0] sm:$0xff] }
   0x9   :  { %v2087_v31 = vpack.c.bf16 %v56_v29, %v52_v28  ;;  %v2057_v35 = vpack.c.bf16 %v53_v32, %v49_v30  ;;  %v58_v36 = vld [vmem:[%s3772_s1 + $0xc8] sm:$0xff]  ;;  %v60_v38 = vld [vmem:[%s3772_s1 + $0xd8] sm:$0xff]  ;;  %v2089_v39 = vpack.c.bf16 %v55_v34, %v51_v33  ;;  %v57_v42 = vld [vmem:[%s3772_s1 + $0xc0] sm:$0xff] }
   0xa   :  { %2054 = vmatpush1.bf16.msra.mxu0 %v2053_v22  ;;  %v62_v37 = vld [vmem:[%s3772_s1 + $0xe8] sm:$0xff]  ;;  %v64_v41 = vld [vmem:[%s3772_s1 + $0xf8] sm:$0xff]  ;;  %v61_v43 = vld [vmem:[%s3772_s1 + $0xe0] sm:$0xff] }
   0xb   :  { %2086 = vmatpush1.bf16.msra.mxu1 %v2085_v26  ;;  %2056 = vmatprep.subr.bf16.mxu0 %v2055_v27  ;;  %v2059_v40 = vpack.c.bf16 %v62_v37, %v58_v36  ;;  %v2091_v44 = vpack.c.bf16 %v64_v41, %v60_v38  ;;  %v59_v45 = vld [vmem:[%s3772_s1 + $0xd0] sm:$0xff]  ;;  %v66_v47 = vld [vmem:[%s3772_s1 + $0x108] sm:$0xff]  ;;  %v68_v49 = vld [vmem:[%s3772_s1 + $0x118] sm:$0xff]  ;;  %v2061_v51 = vpack.c.bf16 %v61_v43, %v57_v42 }
   0xc   :  { %2088 = vmatprep.subr.bf16.mxu1 %v2087_v31  ;;  %v63_v46 = vld [vmem:[%s3772_s1 + $0xf0] sm:$0xff]  ;;  %v70_v48 = vld [vmem:[%s3772_s1 + $0x128] sm:$0xff]  ;;  %v72_v50 = vld [vmem:[%s3772_s1 + $0x138] sm:$0xff] }
   0xd   :  { %v2093_v52 = vpack.c.bf16 %v63_v46, %v59_v45  ;;  %v2063_v53 = vpack.c.bf16 %v70_v48, %v66_v47  ;;  %v65_v54 = vld [vmem:[%s3772_s1 + $0x100] sm:$0xff]  ;;  %v67_v56 = vld [vmem:[%s3772_s1 + $0x110] sm:$0xff]  ;;  %v2095_v57 = vpack.c.bf16 %v72_v50, %v68_v49  ;;  %v74_v59 = vld [vmem:[%s3772_s1 + $0x148] sm:$0xff] }
   0xe   :  { %2058 = vmatpush1.bf16.msra.mxu0 %v2057_v35  ;;  %v69_v55 = vld [vmem:[%s3772_s1 + $0x120] sm:$0xff]  ;;  %v71_v58 = vld [vmem:[%s3772_s1 + $0x130] sm:$0xff]  ;;  %v78_v60 = vld [vmem:[%s3772_s1 + $0x168] sm:$0xff] }
   0xf   :  { %2090 = vmatpush1.bf16.msra.mxu1 %v2089_v39  ;;  %2060 = vmatprep.subr.bf16.mxu0 %v2059_v40  ;;  %v76_v61 = vld [vmem:[%s3772_s1 + $0x158] sm:$0xff]  ;;  %v2065_v63 = vpack.c.bf16 %v69_v55, %v65_v54  ;;  %v2097_v0 = vpack.c.bf16 %v71_v58, %v67_v56  ;;  %v2067_v1 = vpack.c.bf16 %v78_v60, %v74_v59  ;;  %v73_v2 = vld [vmem:[%s3772_s1 + $0x140] sm:$0xff]  ;;  %v75_v5 = vld [vmem:[%s3772_s1 + $0x150] sm:$0xff] }
  0x10   :  { %2092 = vmatprep.subr.bf16.mxu1 %v2091_v44  ;;  %v80_v62 = vld [vmem:[%s3772_s1 + $0x178] sm:$0xff]  ;;  %v77_v4 = vld [vmem:[%s3772_s1 + $0x160] sm:$0xff]  ;;  %v79_v7 = vld [vmem:[%s3772_s1 + $0x170] sm:$0xff] }
  0x11   :  { %v2099_v6 = vpack.c.bf16 %v80_v62, %v76_v61  ;;  %v82_v8 = vld [vmem:[%s3772_s1 + $0x188] sm:$0xff]  ;;  %v84_v10 = vld [vmem:[%s3772_s1 + $0x198] sm:$0xff]  ;;  %v2069_v12 = vpack.c.bf16 %v77_v4, %v73_v2  ;;  %v2101_v13 = vpack.c.bf16 %v79_v7, %v75_v5  ;;  %v81_v15 = vld [vmem:[%s3772_s1 + $0x180] sm:$0xff] }
  0x12   :  { %2062 = vmatpush1.bf16.msra.mxu0 %v2061_v51  ;;  %v86_v9 = vld [vmem:[%s3772_s1 + $0x1a8] sm:$0xff]  ;;  %v88_v11 = vld [vmem:[%s3772_s1 + $0x1b8] sm:$0xff]  ;;  %v85_v16 = vld [vmem:[%s3772_s1 + $0x1a0] sm:$0xff] }
  0x13   :  { %2094 = vmatpush1.bf16.msra.mxu1 %v2093_v52  ;;  %2064 = vmatprep.subr.bf16.mxu0 %v2063_v53  ;;  %v2071_v14 = vpack.c.bf16 %v86_v9, %v82_v8  ;;  %v83_v17 = vld [vmem:[%s3772_s1 + $0x190] sm:$0xff]  ;;  %v2103_v18 = vpack.c.bf16 %v88_v11, %v84_v10  ;;  %v90_v20 = vld [vmem:[%s3772_s1 + $0x1c8] sm:$0xff]  ;;  %v92_v22 = vld [vmem:[%s3772_s1 + $0x1d8] sm:$0xff]  ;;  %v2073_v24 = vpack.c.bf16 %v85_v16, %v81_v15 }
  0x14   :  { %2096 = vmatprep.subr.bf16.mxu1 %v2095_v57  ;;  %v87_v19 = vld [vmem:[%s3772_s1 + $0x1b0] sm:$0xff]  ;;  %v94_v21 = vld [vmem:[%s3772_s1 + $0x1e8] sm:$0xff]  ;;  %v96_v23 = vld [vmem:[%s3772_s1 + $0x1f8] sm:$0xff] }
  0x15   :  { %v2105_v25 = vpack.c.bf16 %v87_v19, %v83_v17  ;;  %v2075_v26 = vpack.c.bf16 %v94_v21, %v90_v20  ;;  %v89_v27 = vld [vmem:[%s3772_s1 + $0x1c0] sm:$0xff]  ;;  %v91_v29 = vld [vmem:[%s3772_s1 + $0x1d0] sm:$0xff]  ;;  %v2107_v30 = vpack.c.bf16 %v96_v23, %v92_v22  ;;  %v385_v32 = vld [vmem:[%s3773_s2 + $0x8] sm:$0xff] }
  0x16   :  { %2066 = vmatpush1.bf16.msra.mxu0 %v2065_v63  ;;  %v93_v28 = vld [vmem:[%s3772_s1 + $0x1e0] sm:$0xff]  ;;  %v95_v31 = vld [vmem:[%s3772_s1 + $0x1f0] sm:$0xff]  ;;  %v389_v33 = vld [vmem:[%s3773_s2 + $0x28] sm:$0xff] }
  0x17   :  { %2098 = vmatpush1.bf16.msra.mxu1 %v2097_v0  ;;  %2068 = vmatprep.subr.bf16.mxu0 %v2067_v1  ;;  %v387_v34 = vld [vmem:[%s3773_s2 + $0x18] sm:$0xff]  ;;  %v2077_v36 = vpack.c.bf16 %v93_v28, %v89_v27  ;;  %v2109_v37 = vpack.c.bf16 %v95_v31, %v91_v29  ;;  %v3090_v38 = vpack.c.bf16 %v389_v33, %v385_v32  ;;  %v384_v39 = vld [vmem:[%s3773_s2] sm:$0xff]  ;;  %v386_v42 = vld [vmem:[%s3773_s2 + $0x10] sm:$0xff] }
  0x18   :  { %2100 = vmatprep.subr.bf16.mxu1 %v2099_v6  ;;  %v391_v35 = vld [vmem:[%s3773_s2 + $0x38] sm:$0xff]  ;;  %v388_v40 = vld [vmem:[%s3773_s2 + $0x20] sm:$0xff]  ;;  %v390_v43 = vld [vmem:[%s3773_s2 + $0x30] sm:$0xff] }
  0x19   :  { %v3098_v41 = vpack.c.bf16 %v391_v35, %v387_v34  ;;  %v393_v44 = vld [vmem:[%s3773_s2 + $0x48] sm:$0xff]  ;;  %v25_v46 = vld [vmem:[%s3774_s0] sm:$0xff]  ;;  %v3115_v47 = vpack.c.bf16 %v388_v40, %v384_v39  ;;  %v395_v48 = vld [vmem:[%s3773_s2 + $0x58] sm:$0xff]  ;;  %v3124_v50 = vpack.c.bf16 %v390_v43, %v386_v42 }
  0x1a   :  { %2070 = vmatpush1.bf16.msra.mxu0 %v2069_v12  ;;  %v397_v45 = vld [vmem:[%s3773_s2 + $0x68] sm:$0xff]  ;;  %v399_v49 = vld [vmem:[%s3773_s2 + $0x78] sm:$0xff]  ;;  %v392_v51 = vld [vmem:[%s3773_s2 + $0x40] sm:$0xff] }
  0x1b   :  { %2102 = vmatpush1.bf16.msra.mxu1 %v2101_v13  ;;  %2072 = vmatprep.subr.bf16.mxu0 %v2071_v14  ;;  %v396_v52 = vld [vmem:[%s3773_s2 + $0x60] sm:$0xff]  ;;  %v3133_v53 = vpack.c.bf16 %v397_v45, %v393_v44  ;;  %v394_v54 = vld [vmem:[%s3773_s2 + $0x50] sm:$0xff]  ;;  %v3141_v56 = vpack.c.bf16 %v399_v49, %v395_v48  ;;  %v401_v57 = vld [vmem:[%s3773_s2 + $0x88] sm:$0xff] }
  0x1c   :  { %2104 = vmatprep.subr.bf16.mxu1 %v2103_v18  ;;  %v398_v55 = vld [vmem:[%s3773_s2 + $0x70] sm:$0xff]  ;;  %v405_v58 = vld [vmem:[%s3773_s2 + $0xa8] sm:$0xff]  ;;  %v3153_v60 = vpack.c.bf16 %v396_v52, %v392_v51  ;;  %v403_v61 = vld [vmem:[%s3773_s2 + $0x98] sm:$0xff] }
  0x1d   :  { %v26_v59 = vld [vmem:[%s3774_s0 + $0x8] sm:$0xff]  ;;  %v407_v62 = vld [vmem:[%s3773_s2 + $0xb8] sm:$0xff]  ;;  %v3163_v63 = vpack.c.bf16 %v398_v55, %v394_v54  ;;  %v400_v0 = vld [vmem:[%s3773_s2 + $0x80] sm:$0xff]  ;;  %v3173_v2 = vpack.c.bf16 %v405_v58, %v401_v57 }
  0x1e   :  { %2074 = vmatpush1.bf16.msra.mxu0 %v2073_v24  ;;  %v404_v1 = vld [vmem:[%s3773_s2 + $0xa0] sm:$0xff]  ;;  %v402_v4 = vld [vmem:[%s3773_s2 + $0x90] sm:$0xff]  ;;  %v3182_v6 = vpack.c.bf16 %v407_v62, %v403_v61  ;;  %v409_v7 = vld [vmem:[%s3773_s2 + $0xc8] sm:$0xff] }
  0x1f   :  { %2106 = vmatpush1.bf16.msra.mxu1 %v2105_v25  ;;  %2076 = vmatprep.subr.bf16.mxu0 %v2075_v26  ;;  %v406_v5 = vld [vmem:[%s3773_s2 + $0xb0] sm:$0xff]  ;;  %v413_v8 = vld [vmem:[%s3773_s2 + $0xe8] sm:$0xff]  ;;  %v3194_v10 = vpack.c.bf16 %v404_v1, %v400_v0  ;;  %v411_v11 = vld [vmem:[%s3773_s2 + $0xd8] sm:$0xff] }
  0x20   :  { %2108 = vmatprep.subr.bf16.mxu1 %v2107_v30  ;;  %v27_v9 = vld [vmem:[%s3774_s0 + $0x10] sm:$0xff]  ;;  %v415_v12 = vld [vmem:[%s3773_s2 + $0xf8] sm:$0xff]  ;;  %v3204_v13 = vpack.c.bf16 %v406_v5, %v402_v4  ;;  %v408_v14 = vld [vmem:[%s3773_s2 + $0xc0] sm:$0xff]  ;;  %v3214_v16 = vpack.c.bf16 %v413_v8, %v409_v7 }
  0x21   :  { %v412_v15 = vld [vmem:[%s3773_s2 + $0xe0] sm:$0xff]  ;;  %v410_v17 = vld [vmem:[%s3773_s2 + $0xd0] sm:$0xff]  ;;  %v3223_v19 = vpack.c.bf16 %v415_v12, %v411_v11  ;;  %v417_v20 = vld [vmem:[%s3773_s2 + $0x108] sm:$0xff] }
  0x22   :  { %2078 = vmatpush1.bf16.msra.mxu0 %v2077_v36  ;;  %v414_v18 = vld [vmem:[%s3773_s2 + $0xf0] sm:$0xff]  ;;  %v421_v21 = vld [vmem:[%s3773_s2 + $0x128] sm:$0xff]  ;;  %v28_v22 = vld [vmem:[%s3774_s0 + $0x18] sm:$0xff]  ;;  %v3235_v23 = vpack.c.bf16 %v412_v15, %v408_v14 }
  0x23   :  { %2110 = vmatpush1.bf16.msra.mxu1 %v2109_v37  ;;  %2112 = vmatprep.subr.bf16.mxu0 %v3090_v38  ;;  %v419_v24 = vld [vmem:[%s3773_s2 + $0x118] sm:$0xff]  ;;  %v3245_v26 = vpack.c.bf16 %v414_v18, %v410_v17  ;;  %v416_v27 = vld [vmem:[%s3773_s2 + $0x100] sm:$0xff]  ;;  %v3255_v29 = vpack.c.bf16 %v421_v21, %v417_v20  ;;  %v418_v30 = vld [vmem:[%s3773_s2 + $0x110] sm:$0xff] }
  0x24   :  { %2144 = vmatprep.subr.bf16.mxu1 %v3098_v41  ;;  %v423_v25 = vld [vmem:[%s3773_s2 + $0x138] sm:$0xff]  ;;  %v420_v28 = vld [vmem:[%s3773_s2 + $0x120] sm:$0xff]  ;;  %v422_v31 = vld [vmem:[%s3773_s2 + $0x130] sm:$0xff] }
  0x25   :  { %184 = vmatmul.mubr.f32.vlgmr.msra.gmra.mrb[0].mxu0 %v25_v46  ;;  %v3264_v32 = vpack.c.bf16 %v423_v25, %v419_v24  ;;  %v425_v33 = vld [vmem:[%s3773_s2 + $0x148] sm:$0xff]  ;;  %v29_v35 = vld [vmem:[%s3774_s0 + $0x20] sm:$0xff]  ;;  %v3276_v36 = vpack.c.bf16 %v420_v28, %v416_v27  ;;  %v427_v37 = vld [vmem:[%s3773_s2 + $0x158] sm:$0xff]  ;;  %v3286_v40 = vpack.c.bf16 %v422_v31, %v418_v30  ;;  %v99_v28 = vlaneseq }
  0x26   :  { %297 = vmatmul.mubr.f32.vlgmr.msra.gmra.mrb[0].mxu1 %v25_v46  ;;  %2114 = vmatpush1.bf16.msra.mxu0 %v3115_v47  ;;  %v429_v34 = vld [vmem:[%s3773_s2 + $0x168] sm:$0xff]  ;;  %v431_v39 = vld [vmem:[%s3773_s2 + $0x178] sm:$0xff]  ;;  %v424_v42 = vld [vmem:[%s3773_s2 + $0x140] sm:$0xff] }
  0x27   :  { %2146 = vmatpush1.bf16.msra.mxu1 %v3124_v50  ;;  %189 = vmatprep.mubr.f32.mxu0 %v2846_v3  ;;  %v428_v43 = vld [vmem:[%s3773_s2 + $0x160] sm:$0xff]  ;;  %v3296_v44 = vpack.c.bf16 %v429_v34, %v425_v33  ;;  %v426_v45 = vld [vmem:[%s3773_s2 + $0x150] sm:$0xff]  ;;  %v3305_v48 = vpack.c.bf16 %v431_v39, %v427_v37  ;;  %v433_v49 = vld [vmem:[%s3773_s2 + $0x188] sm:$0xff]  ;;  %v100_v30 = vshrl.u32 %v99_v28, 7 }
  0x28   :  { %302 = vmatprep.mubr.f32.mxu1 %v2846_v3  ;;  %2116 = vmatprep.subr.bf16.mxu0 %v3133_v53  ;;  %v430_v46 = vld [vmem:[%s3773_s2 + $0x170] sm:$0xff]  ;;  %v437_v51 = vld [vmem:[%s3773_s2 + $0x1a8] sm:$0xff]  ;;  %v3317_v54 = vpack.c.bf16 %v428_v43, %v424_v42  ;;  %v435_v55 = vld [vmem:[%s3773_s2 + $0x198] sm:$0xff] }
  0x29   :  { %190 = vmatmul.mubr.f32.gmra.mrb[2].mxu0 %v26_v59  ;;  %2148 = vmatprep.subr.bf16.mxu1 %v3141_v56  ;;  %v30_v52 = vld [vmem:[%s3774_s0 + $0x28] sm:$0xff]  ;;  %v439_v57 = vld [vmem:[%s3773_s2 + $0x1b8] sm:$0xff]  ;;  %v3327_v58 = vpack.c.bf16 %v430_v46, %v426_v45  ;;  %v436_v61 = vld [vmem:[%s3773_s2 + $0x1a0] sm:$0xff]  ;;  %v3337_v62 = vpack.c.bf16 %v437_v51, %v433_v49  ;;  %v101_v31 = vsub.s32 0, %v100_v30  ;;  %v105_v34 = vsub.s32 1, %v100_v30 }
  0x2a   :  { %303 = vmatmul.mubr.f32.gmra.mrb[2].mxu1 %v26_v59  ;;  %2118 = vmatpush1.bf16.msra.mxu0 %v3153_v60  ;;  %v432_v59 = vld [vmem:[%s3773_s2 + $0x180] sm:$0xff]  ;;  %v434_v0 = vld [vmem:[%s3773_s2 + $0x190] sm:$0xff]  ;;  %v3346_v4 = vpack.c.bf16 %v439_v57, %v435_v55  ;;  %v441_v5 = vld [vmem:[%s3773_s2 + $0x1c8] sm:$0xff]  ;;  %v113_v42 = vsub.s32 3, %v100_v30 }
  0x2b   :  { %2150 = vmatpush1.bf16.msra.mxu1 %v3163_v63  ;;  %195 = vmatprep.mubr.f32.mxu0 %v2846_v3  ;;  %v438_v1 = vld [vmem:[%s3773_s2 + $0x1b0] sm:$0xff]  ;;  %v445_v7 = vld [vmem:[%s3773_s2 + $0x1e8] sm:$0xff]  ;;  %v443_v11 = vld [vmem:[%s3773_s2 + $0x1d8] sm:$0xff] }
  0x2c   :  { %308 = vmatprep.mubr.f32.mxu1 %v2846_v3  ;;  %2120 = vmatprep.subr.bf16.mxu0 %v3173_v2  ;;  %v31_v8 = vld [vmem:[%s3774_s0 + $0x30] sm:$0xff]  ;;  %v447_v12 = vld [vmem:[%s3773_s2 + $0x1f8] sm:$0xff]  ;;  %v3368_v14 = vpack.c.bf16 %v438_v1, %v434_v0  ;;  %v440_v15 = vld [vmem:[%s3773_s2 + $0x1c0] sm:$0xff]  ;;  %v3378_v18 = vpack.c.bf16 %v445_v7, %v441_v5 }
  0x2d   :  { %196 = vmatmul.mubr.f32.gmra.mrb[4].mxu0 %v27_v9  ;;  %2152 = vmatprep.subr.bf16.mxu1 %v3182_v6  ;;  %v444_v17 = vld [vmem:[%s3773_s2 + $0x1e0] sm:$0xff]  ;;  %v442_v20 = vld [vmem:[%s3773_s2 + $0x1d0] sm:$0xff]  ;;  %v32_v24 = vld [vmem:[%s3774_s0 + $0x38] sm:$0xff] }
  0x2e   :  { %309 = vmatmul.mubr.f32.gmra.mrb[4].mxu1 %v27_v9  ;;  %2122 = vmatpush1.bf16.msra.mxu0 %v3194_v10  ;;  %v3358_v9 = vpack.c.bf16 %v436_v61, %v432_v59  ;;  %v446_v21 = vld [vmem:[%s3773_s2 + $0x1f0] sm:$0xff]  ;;  %v3393_v25 = vpack.c.bf16 %v444_v17, %v440_v15  ;;  %v97_v33 = vld [vmem:[%s3775_s3] sm:$0xf]  ;;  %v109_v59 = vsub.s32 2, %v100_v30 }
  0x2f   :  { %2154 = vmatpush1.bf16.msra.mxu1 %v3204_v13  ;;  %201 = vmatprep.mubr.f32.mxu0 %v2846_v3  ;;  %v3397_v27 = vpack.c.bf16 %v446_v21, %v442_v20  ;;  %v3449_v37 = vrot.slane %v97_v33, %v105_v34  ;;  %v3453_v57 = vrot.slane %v97_v33, %v113_v42 }
  0x30   :  { %314 = vmatprep.mubr.f32.mxu1 %v2846_v3  ;;  %2124 = vmatprep.subr.bf16.mxu0 %v3214_v16  ;;  %v3456_v0 = vrot.slane %v97_v33, %v109_v59 }
  0x31   :  { %202 = vmatmul.mubr.f32.gmra.mrb[6].mxu0 %v28_v22  ;;  %2156 = vmatprep.subr.bf16.mxu1 %v3223_v19 }
  0x32   :  { %315 = vmatmul.mubr.f32.gmra.mrb[6].mxu1 %v28_v22  ;;  %2126 = vmatpush1.bf16.msra.mxu0 %v3235_v23  ;;  %v3387_v22 = vpack.c.bf16 %v447_v12, %v443_v11 }
  0x33   :  { %2158 = vmatpush1.bf16.msra.mxu1 %v3245_v26  ;;  %207 = vmatprep.mubr.f32.mxu0 %v2846_v3 }
  0x34   :  { %320 = vmatprep.mubr.f32.mxu1 %v2846_v3  ;;  %2128 = vmatprep.subr.bf16.mxu0 %v3255_v29 }
  0x35   :  { %208 = vmatmul.mubr.f32.gmra.mrb[8].mxu0 %v29_v35  ;;  %2160 = vmatprep.subr.bf16.mxu1 %v3264_v32 }
  0x36   :  { %321 = vmatmul.mubr.f32.gmra.mrb[8].mxu1 %v29_v35  ;;  %2130 = vmatpush1.bf16.msra.mxu0 %v3276_v36  ;;  %v3447_v35 = vrot.slane %v97_v33, %v101_v31 }
  0x37   :  { %2162 = vmatpush1.bf16.msra.mxu1 %v3286_v40  ;;  %213 = vmatprep.mubr.f32.mxu0 %v2846_v3 }
  0x38   :  { %326 = vmatprep.mubr.f32.mxu1 %v2846_v3  ;;  %2132 = vmatprep.subr.bf16.mxu0 %v3296_v44 }
  0x39   :  { %214 = vmatmul.mubr.f32.gmra.mrb[10].mxu0 %v30_v52  ;;  %2164 = vmatprep.subr.bf16.mxu1 %v3305_v48 }
  0x3a   :  { %327 = vmatmul.mubr.f32.gmra.mrb[10].mxu1 %v30_v52  ;;  %2134 = vmatpush1.bf16.msra.mxu0 %v3317_v54 }
  0x3b   :  { %2166 = vmatpush1.bf16.msra.mxu1 %v3327_v58  ;;  %219 = vmatprep.mubr.f32.mxu0 %v2846_v3 }
  0x3c   :  { %332 = vmatprep.mubr.f32.mxu1 %v2846_v3  ;;  %2136 = vmatprep.subr.bf16.mxu0 %v3337_v62 }
  0x3d   :  { %220 = vmatmul.mubr.f32.gmra.mrb[12].mxu0 %v31_v8  ;;  %2168 = vmatprep.subr.bf16.mxu1 %v3346_v4 }
  0x3e   :  { %333 = vmatmul.mubr.f32.gmra.mrb[12].mxu1 %v31_v8  ;;  %2138 = vmatpush1.bf16.msra.mxu0 %v3358_v9 }
  0x3f   :  { %2170 = vmatpush1.bf16.msra.mxu1 %v3368_v14  ;;  %225 = vmatprep.mubr.f32.mxu0 %v2846_v3 }
  0x40   :  { %338 = vmatprep.mubr.f32.mxu1 %v2846_v3  ;;  %2140 = vmatprep.subr.bf16.mxu0 %v3378_v18 }
  0x41   :  { %226 = vmatmul.mubr.f32.gmra.mrb[14].mxu0 %v32_v24  ;;  %2172 = vmatprep.subr.bf16.mxu1 %v3387_v22 }
  0x42   :  { %339 = vmatmul.mubr.f32.gmra.mrb[14].mxu1 %v32_v24  ;;  %2142 = vmatpush1.bf16.msra.mxu0 %v3393_v25 }
  0x43   :  { %2174 = vmatpush1.bf16.msra.mxu1 %v3397_v27  ;;  %512 = vmatprep.mubr.f32.mxu0 %v2846_v3 }
  0x44   :  { %583 = vmatprep.mubr.f32.mxu1 %v2846_v3  ;;  %2176 = vmatprep.subr.bf16.mxu0 %v3090_v38 }
  0x45   :  { %513 = vmatmul.mubr.f32.vlgmr.msra.gmra.mrb[0].mxu0 %v2846_v3  ;;  %2208 = vmatprep.subr.bf16.mxu1 %v3098_v41 }
  0x46   :  { %584 = vmatmul.mubr.f32.vlgmr.msra.gmra.mrb[0].mxu1 %v2846_v3  ;;  %2178 = vmatpush1.bf16.msra.mxu0 %v3115_v47 }
  0x47   :  { %2210 = vmatpush1.bf16.msra.mxu1 %v3124_v50  ;;  %2180 = vmatprep.subr.bf16.mxu0 %v3133_v53 }
  0x48   :  { %2212 = vmatprep.subr.bf16.mxu1 %v3141_v56  ;;  %689 = vmatprep.mubr.f32.mxu0 %v2846_v3 }
  0x49   :  { %760 = vmatprep.mubr.f32.mxu1 %v2846_v3 }
  0x4a   :  { %2182 = vmatpush1.bf16.msra.mxu0 %v3153_v60 }
  0x4b   :  { %2214 = vmatpush1.bf16.msra.mxu1 %v3163_v63  ;;  %2184 = vmatprep.subr.bf16.mxu0 %v3173_v2 }
  0x4c   :  { %2216 = vmatprep.subr.bf16.mxu1 %v3182_v6 }
  0x4e   :  { %2186 = vmatpush1.bf16.msra.mxu0 %v3194_v10 }
  0x4f   :  { %2218 = vmatpush1.bf16.msra.mxu1 %v3204_v13  ;;  %2188 = vmatprep.subr.bf16.mxu0 %v3214_v16 }
  0x50   :  { %2220 = vmatprep.subr.bf16.mxu1 %v3223_v19 }
  0x52   :  { %2190 = vmatpush1.bf16.msra.mxu0 %v3235_v23 }
  0x53   :  { %2222 = vmatpush1.bf16.msra.mxu1 %v3245_v26  ;;  %2192 = vmatprep.subr.bf16.mxu0 %v3255_v29 }
  0x54   :  { %2224 = vmatprep.subr.bf16.mxu1 %v3264_v32 }
  0x56   :  { %2194 = vmatpush1.bf16.msra.mxu0 %v3276_v36 }
  0x57   :  { %2226 = vmatpush1.bf16.msra.mxu1 %v3286_v40  ;;  %2196 = vmatprep.subr.bf16.mxu0 %v3296_v44 }
  0x58   :  { %2228 = vmatprep.subr.bf16.mxu1 %v3305_v48 }
  0x5a   :  { %2198 = vmatpush1.bf16.msra.mxu0 %v3317_v54 }
  0x5b   :  { %2230 = vmatpush1.bf16.msra.mxu1 %v3327_v58  ;;  %2200 = vmatprep.subr.bf16.mxu0 %v3337_v62 }
  0x5c   :  { %2232 = vmatprep.subr.bf16.mxu1 %v3346_v4 }
  0x5e   :  { %2202 = vmatpush1.bf16.msra.mxu0 %v3358_v9 }
  0x5f   :  { %2234 = vmatpush1.bf16.msra.mxu1 %v3368_v14  ;;  %2204 = vmatprep.subr.bf16.mxu0 %v3378_v18 }
  0x60   :  { %2236 = vmatprep.subr.bf16.mxu1 %v3387_v22 }
  0x62   :  { %2206 = vmatpush1.bf16.msra.mxu0 %v3393_v25 }
  0x63   :  { %2238 = vmatpush1.bf16.msra.mxu1 %v3397_v27  ;;  %2240 = vmatprep.subr.bf16.mxu0 %v3090_v38 }
  0x64   :  { %2272 = vmatprep.subr.bf16.mxu1 %v3098_v41 }
 0x118   :  { %v514_v39 = vpop.f32.mrb[0].mxu0 }
 0x119   :  { %v2647_v43 = vadd.f32 %v514_v39, %v3447_v35  ;;  %v585_v45 = vpop.f32.mrb[0].mxu1  ;;  %v516_v46 = vpop.f32.mrb[1].mxu0 }
 0x11a   :  { %v2648_v49 = vadd.f32 %v516_v46, %v3449_v37  ;;  %v587_v51 = vpop.f32.mrb[1].mxu1  ;;  %v2663_v5 = vadd.f32 %v585_v45, %v3456_v0 }
 0x11b   :  { %v1969_v52 = vmul.f32 -1.442695, %v2647_v43  ;;  %v2664_v61 = vadd.f32 %v587_v51, %v3453_v57 }
 0x11c   :  { %v1970_v55 = vmul.f32 -1.442695, %v2648_v49 }
 0x11d   :  { %2714 = vpow2.f32 %v1969_v52  ;;  %v1971_v1 = vmul.f32 -1.442695, %v2664_v61 }
 0x11e   :  { %2716 = vpow2.f32 %v1970_v55 }
 0x11f   :  { %2718 = vpow2.f32 %v1971_v1 }
 0x120   :  { %2720 = vtanh.f32 %v2663_v5 }
 0x127   :  { %v2715_v7 = vpop.eup %2714 }
 0x128   :  { %v2717_v8 = vpop.eup %2716  ;;  %v597_v11 = vadd.f32 1.0, %v2715_v7 }
 0x129   :  { %v603_v12 = vadd.f32 1.0, %v2717_v8  ;;  %v2719_v15 = vpop.eup %2718 }
 0x12a   :  { %2722 = vrcp.f32 %v597_v11  ;;  %v2721_v17 = vpop.eup %2720  ;;  %v610_v28 = vadd.f32 1.0, %v2719_v15 }
 0x12b   :  { %2724 = vrcp.f32 %v603_v12 }
 0x12c   :  { %2726 = vrcp.f32 %v610_v28 }
 0x134   :  { %v2723_v20 = vpop.eup %2722 }
 0x135   :  { %v2725_v21 = vpop.eup %2724  ;;  %v614_v24 = vmul.f32 %v2723_v20, %v2721_v17 }
 0x136   :  { %v613_v30 = vmul.f32 0.0, %v2725_v21  ;;  %v2727_v33 = vpop.eup %2726 }
 0x138   :  { %v3459_v31 = vadd.f32 %v614_v24, %v613_v30 }
 0x13a   :  { %2728 = vtanh.f32 %v3459_v31 }
 0x144   :  { %v2729_v34 = vpop.eup %2728 }
 0x145   :  { %v617_v39 = vmul.f32 %v2729_v34, %v2727_v33 }
 0x147   :  { %690 = vmatmul.mubr.f32.vlgmr.msra.gmra.mrb[2].mxu0 %v617_v39  ;;  %761 = vmatmul.mubr.f32.vlgmr.msra.gmra.mrb[2].mxu1 %v617_v39 }
 0x148   :  { %2242 = vmatpush1.bf16.msra.mxu0 %v3115_v47  ;;  %2274 = vmatpush1.bf16.msra.mxu1 %v3124_v50 }
 0x149   :  { %2244 = vmatprep.subr.bf16.mxu0 %v3133_v53  ;;  %2276 = vmatprep.subr.bf16.mxu1 %v3141_v56 }
 0x14a   :  { %866 = vmatprep.mubr.f32.mxu0 %v2846_v3  ;;  %937 = vmatprep.mubr.f32.mxu1 %v2846_v3 }
 0x14c   :  { %2246 = vmatpush1.bf16.msra.mxu0 %v3153_v60  ;;  %2278 = vmatpush1.bf16.msra.mxu1 %v3163_v63 }
 0x14d   :  { %2248 = vmatprep.subr.bf16.mxu0 %v3173_v2  ;;  %2280 = vmatprep.subr.bf16.mxu1 %v3182_v6 }
 0x150   :  { %2250 = vmatpush1.bf16.msra.mxu0 %v3194_v10  ;;  %2282 = vmatpush1.bf16.msra.mxu1 %v3204_v13 }
 0x151   :  { %2252 = vmatprep.subr.bf16.mxu0 %v3214_v16  ;;  %2284 = vmatprep.subr.bf16.mxu1 %v3223_v19 }
 0x154   :  { %2254 = vmatpush1.bf16.msra.mxu0 %v3235_v23  ;;  %2286 = vmatpush1.bf16.msra.mxu1 %v3245_v26 }
 0x155   :  { %2256 = vmatprep.subr.bf16.mxu0 %v3255_v29  ;;  %2288 = vmatprep.subr.bf16.mxu1 %v3264_v32 }
 0x158   :  { %2258 = vmatpush1.bf16.msra.mxu0 %v3276_v36  ;;  %2290 = vmatpush1.bf16.msra.mxu1 %v3286_v40 }
 0x159   :  { %2260 = vmatprep.subr.bf16.mxu0 %v3296_v44  ;;  %2292 = vmatprep.subr.bf16.mxu1 %v3305_v48 }
 0x15c   :  { %2262 = vmatpush1.bf16.msra.mxu0 %v3317_v54  ;;  %2294 = vmatpush1.bf16.msra.mxu1 %v3327_v58 }
 0x15d   :  { %2264 = vmatprep.subr.bf16.mxu0 %v3337_v62  ;;  %2296 = vmatprep.subr.bf16.mxu1 %v3346_v4 }
 0x160   :  { %2266 = vmatpush1.bf16.msra.mxu0 %v3358_v9  ;;  %2298 = vmatpush1.bf16.msra.mxu1 %v3368_v14 }
 0x161   :  { %2268 = vmatprep.subr.bf16.mxu0 %v3378_v18  ;;  %2300 = vmatprep.subr.bf16.mxu1 %v3387_v22 }
 0x164   :  { %2270 = vmatpush1.bf16.msra.mxu0 %v3393_v25  ;;  %2302 = vmatpush1.bf16.msra.mxu1 %v3397_v27 }
 0x165   :  { %2304 = vmatprep.subr.bf16.mxu0 %v3090_v38  ;;  %2336 = vmatprep.subr.bf16.mxu1 %v3098_v41 }
 0x21a   :  { %v691_v42 = vpop.f32.mrb[2].mxu0  ;;  %v762_v43 = vpop.f32.mrb[2].mxu1 }
 0x21b   :  { %v2649_v45 = vadd.f32 %v691_v42, %v3447_v35  ;;  %v693_v46 = vpop.f32.mrb[3].mxu0  ;;  %v764_v49 = vpop.f32.mrb[3].mxu1  ;;  %v2665_v1 = vadd.f32 %v762_v43, %v3456_v0 }
 0x21c   :  { %v2650_v51 = vadd.f32 %v693_v46, %v3449_v37  ;;  %v2666_v59 = vadd.f32 %v764_v49, %v3453_v57 }
 0x21d   :  { %v1972_v52 = vmul.f32 -1.442695, %v2649_v45 }
 0x21e   :  { %v1973_v55 = vmul.f32 -1.442695, %v2650_v51  ;;  %v1974_v61 = vmul.f32 -1.442695, %v2666_v59 }
 0x21f   :  { %2730 = vpow2.f32 %v1972_v52 }
 0x220   :  { %2732 = vpow2.f32 %v1973_v55 }
 0x221   :  { %2734 = vpow2.f32 %v1974_v61 }
 0x222   :  { %2736 = vtanh.f32 %v2665_v1 }
 0x229   :  { %v2731_v5 = vpop.eup %2730 }
 0x22a   :  { %v2733_v7 = vpop.eup %2732  ;;  %v774_v8 = vadd.f32 1.0, %v2731_v5 }
 0x22b   :  { %v780_v11 = vadd.f32 1.0, %v2733_v7  ;;  %v2735_v12 = vpop.eup %2734 }
 0x22c   :  { %2738 = vrcp.f32 %v774_v8  ;;  %v2737_v15 = vpop.eup %2736  ;;  %v787_v24 = vadd.f32 1.0, %v2735_v12 }
 0x22d   :  { %2740 = vrcp.f32 %v780_v11 }
 0x22e   :  { %2742 = vrcp.f32 %v787_v24 }
 0x236   :  { %v2739_v17 = vpop.eup %2738 }
 0x237   :  { %v2741_v20 = vpop.eup %2740  ;;  %v791_v21 = vmul.f32 %v2739_v17, %v2737_v15 }
 0x238   :  { %v790_v28 = vmul.f32 %v2741_v20, %v3459_v31  ;;  %v2743_v33 = vpop.eup %2742 }
 0x23a   :  { %v3501_v30 = vadd.f32 %v791_v21, %v790_v28 }
 0x23c   :  { %2744 = vtanh.f32 %v3501_v30 }
 0x246   :  { %v2745_v34 = vpop.eup %2744 }
 0x247   :  { %v794_v39 = vmul.f32 %v2745_v34, %v2743_v33 }
 0x249   :  { %867 = vmatmul.mubr.f32.vlgmr.msra.gmra.mrb[4].mxu0 %v794_v39  ;;  %938 = vmatmul.mubr.f32.vlgmr.msra.gmra.mrb[4].mxu1 %v794_v39 }
 0x24a   :  { %2306 = vmatpush1.bf16.msra.mxu0 %v3115_v47  ;;  %2338 = vmatpush1.bf16.msra.mxu1 %v3124_v50 }
 0x24b   :  { %2308 = vmatprep.subr.bf16.mxu0 %v3133_v53  ;;  %2340 = vmatprep.subr.bf16.mxu1 %v3141_v56 }
 0x24c   :  { %1043 = vmatprep.mubr.f32.mxu0 %v2846_v3  ;;  %1114 = vmatprep.mubr.f32.mxu1 %v2846_v3 }
 0x24e   :  { %2310 = vmatpush1.bf16.msra.mxu0 %v3153_v60  ;;  %2342 = vmatpush1.bf16.msra.mxu1 %v3163_v63 }
 0x24f   :  { %2312 = vmatprep.subr.bf16.mxu0 %v3173_v2  ;;  %2344 = vmatprep.subr.bf16.mxu1 %v3182_v6 }
 0x252   :  { %2314 = vmatpush1.bf16.msra.mxu0 %v3194_v10  ;;  %2346 = vmatpush1.bf16.msra.mxu1 %v3204_v13 }
 0x253   :  { %2316 = vmatprep.subr.bf16.mxu0 %v3214_v16  ;;  %2348 = vmatprep.subr.bf16.mxu1 %v3223_v19 }
 0x256   :  { %2318 = vmatpush1.bf16.msra.mxu0 %v3235_v23  ;;  %2350 = vmatpush1.bf16.msra.mxu1 %v3245_v26 }
 0x257   :  { %2320 = vmatprep.subr.bf16.mxu0 %v3255_v29  ;;  %2352 = vmatprep.subr.bf16.mxu1 %v3264_v32 }
 0x25a   :  { %2322 = vmatpush1.bf16.msra.mxu0 %v3276_v36  ;;  %2354 = vmatpush1.bf16.msra.mxu1 %v3286_v40 }
 0x25b   :  { %2324 = vmatprep.subr.bf16.mxu0 %v3296_v44  ;;  %2356 = vmatprep.subr.bf16.mxu1 %v3305_v48 }
 0x25e   :  { %2326 = vmatpush1.bf16.msra.mxu0 %v3317_v54  ;;  %2358 = vmatpush1.bf16.msra.mxu1 %v3327_v58 }
 0x25f   :  { %2328 = vmatprep.subr.bf16.mxu0 %v3337_v62  ;;  %2360 = vmatprep.subr.bf16.mxu1 %v3346_v4 }
 0x262   :  { %2330 = vmatpush1.bf16.msra.mxu0 %v3358_v9  ;;  %2362 = vmatpush1.bf16.msra.mxu1 %v3368_v14 }
 0x263   :  { %2332 = vmatprep.subr.bf16.mxu0 %v3378_v18  ;;  %2364 = vmatprep.subr.bf16.mxu1 %v3387_v22 }
 0x266   :  { %2334 = vmatpush1.bf16.msra.mxu0 %v3393_v25  ;;  %2366 = vmatpush1.bf16.msra.mxu1 %v3397_v27 }
 0x267   :  { %2368 = vmatprep.subr.bf16.mxu0 %v3090_v38  ;;  %2400 = vmatprep.subr.bf16.mxu1 %v3098_v41 }
 0x31c   :  { %v868_v31 = vpop.f32.mrb[4].mxu0  ;;  %v939_v42 = vpop.f32.mrb[4].mxu1 }
 0x31d   :  { %v2651_v43 = vadd.f32 %v868_v31, %v3447_v35  ;;  %v870_v45 = vpop.f32.mrb[5].mxu0  ;;  %v941_v46 = vpop.f32.mrb[5].mxu1  ;;  %v2667_v61 = vadd.f32 %v939_v42, %v3456_v0 }
 0x31e   :  { %v2652_v49 = vadd.f32 %v870_v45, %v3449_v37  ;;  %v2668_v55 = vadd.f32 %v941_v46, %v3453_v57 }
 0x31f   :  { %v1975_v51 = vmul.f32 -1.442695, %v2651_v43 }
 0x320   :  { %v1976_v52 = vmul.f32 -1.442695, %v2652_v49  ;;  %v1977_v59 = vmul.f32 -1.442695, %v2668_v55 }
 0x321   :  { %2746 = vpow2.f32 %v1975_v51 }
 0x322   :  { %2748 = vpow2.f32 %v1976_v52 }
 0x323   :  { %2750 = vpow2.f32 %v1977_v59 }
 0x324   :  { %2752 = vtanh.f32 %v2667_v61 }
 0x32b   :  { %v2747_v1 = vpop.eup %2746 }
 0x32c   :  { %v2749_v5 = vpop.eup %2748  ;;  %v951_v7 = vadd.f32 1.0, %v2747_v1 }
 0x32d   :  { %v957_v8 = vadd.f32 1.0, %v2749_v5  ;;  %v2751_v11 = vpop.eup %2750 }
 0x32e   :  { %2754 = vrcp.f32 %v951_v7  ;;  %v2753_v12 = vpop.eup %2752  ;;  %v964_v21 = vadd.f32 1.0, %v2751_v11 }
 0x32f   :  { %2756 = vrcp.f32 %v957_v8 }
 0x330   :  { %2758 = vrcp.f32 %v964_v21 }
 0x338   :  { %v2755_v15 = vpop.eup %2754 }
 0x339   :  { %v2757_v17 = vpop.eup %2756  ;;  %v968_v20 = vmul.f32 %v2755_v15, %v2753_v12 }
 0x33a   :  { %v967_v24 = vmul.f32 %v2757_v17, %v3501_v30  ;;  %v2759_v33 = vpop.eup %2758 }
 0x33c   :  { %v3543_v28 = vadd.f32 %v968_v20, %v967_v24 }
 0x33e   :  { %2760 = vtanh.f32 %v3543_v28 }
 0x348   :  { %v2761_v34 = vpop.eup %2760 }
 0x349   :  { %v971_v39 = vmul.f32 %v2761_v34, %v2759_v33 }
 0x34b   :  { %1044 = vmatmul.mubr.f32.vlgmr.msra.gmra.mrb[6].mxu0 %v971_v39  ;;  %1115 = vmatmul.mubr.f32.vlgmr.msra.gmra.mrb[6].mxu1 %v971_v39 }
 0x34c   :  { %2370 = vmatpush1.bf16.msra.mxu0 %v3115_v47  ;;  %2402 = vmatpush1.bf16.msra.mxu1 %v3124_v50 }
 0x34d   :  { %2372 = vmatprep.subr.bf16.mxu0 %v3133_v53  ;;  %2404 = vmatprep.subr.bf16.mxu1 %v3141_v56 }
 0x34e   :  { %1220 = vmatprep.mubr.f32.mxu0 %v2846_v3  ;;  %1291 = vmatprep.mubr.f32.mxu1 %v2846_v3 }
 0x350   :  { %2374 = vmatpush1.bf16.msra.mxu0 %v3153_v60  ;;  %2406 = vmatpush1.bf16.msra.mxu1 %v3163_v63 }
 0x351   :  { %2376 = vmatprep.subr.bf16.mxu0 %v3173_v2  ;;  %2408 = vmatprep.subr.bf16.mxu1 %v3182_v6 }
 0x354   :  { %2378 = vmatpush1.bf16.msra.mxu0 %v3194_v10  ;;  %2410 = vmatpush1.bf16.msra.mxu1 %v3204_v13 }
 0x355   :  { %2380 = vmatprep.subr.bf16.mxu0 %v3214_v16  ;;  %2412 = vmatprep.subr.bf16.mxu1 %v3223_v19 }
 0x358   :  { %2382 = vmatpush1.bf16.msra.mxu0 %v3235_v23  ;;  %2414 = vmatpush1.bf16.msra.mxu1 %v3245_v26 }
 0x359   :  { %2384 = vmatprep.subr.bf16.mxu0 %v3255_v29  ;;  %2416 = vmatprep.subr.bf16.mxu1 %v3264_v32 }
 0x35c   :  { %2386 = vmatpush1.bf16.msra.mxu0 %v3276_v36  ;;  %2418 = vmatpush1.bf16.msra.mxu1 %v3286_v40 }
 0x35d   :  { %2388 = vmatprep.subr.bf16.mxu0 %v3296_v44  ;;  %2420 = vmatprep.subr.bf16.mxu1 %v3305_v48 }
 0x360   :  { %2390 = vmatpush1.bf16.msra.mxu0 %v3317_v54  ;;  %2422 = vmatpush1.bf16.msra.mxu1 %v3327_v58 }
 0x361   :  { %2392 = vmatprep.subr.bf16.mxu0 %v3337_v62  ;;  %2424 = vmatprep.subr.bf16.mxu1 %v3346_v4 }
 0x364   :  { %2394 = vmatpush1.bf16.msra.mxu0 %v3358_v9  ;;  %2426 = vmatpush1.bf16.msra.mxu1 %v3368_v14 }
 0x365   :  { %2396 = vmatprep.subr.bf16.mxu0 %v3378_v18  ;;  %2428 = vmatprep.subr.bf16.mxu1 %v3387_v22 }
 0x368   :  { %2398 = vmatpush1.bf16.msra.mxu0 %v3393_v25  ;;  %2430 = vmatpush1.bf16.msra.mxu1 %v3397_v27 }
 0x369   :  { %2432 = vmatprep.subr.bf16.mxu0 %v3090_v38  ;;  %2464 = vmatprep.subr.bf16.mxu1 %v3098_v41 }
 0x41e   :  { %v1045_v30 = vpop.f32.mrb[6].mxu0  ;;  %v1116_v31 = vpop.f32.mrb[6].mxu1 }
 0x41f   :  { %v2653_v42 = vadd.f32 %v1045_v30, %v3447_v35  ;;  %v1047_v43 = vpop.f32.mrb[7].mxu0  ;;  %v1118_v45 = vpop.f32.mrb[7].mxu1  ;;  %v2669_v59 = vadd.f32 %v1116_v31, %v3456_v0 }
 0x420   :  { %v2654_v46 = vadd.f32 %v1047_v43, %v3449_v37  ;;  %v2670_v52 = vadd.f32 %v1118_v45, %v3453_v57 }
 0x421   :  { %v1978_v49 = vmul.f32 -1.442695, %v2653_v42 }
 0x422   :  { %v1979_v51 = vmul.f32 -1.442695, %v2654_v46  ;;  %v1980_v55 = vmul.f32 -1.442695, %v2670_v52 }
 0x423   :  { %2762 = vpow2.f32 %v1978_v49 }
 0x424   :  { %2764 = vpow2.f32 %v1979_v51 }
 0x425   :  { %2766 = vpow2.f32 %v1980_v55 }
 0x426   :  { %2768 = vtanh.f32 %v2669_v59 }
 0x42d   :  { %v2763_v61 = vpop.eup %2762 }
 0x42e   :  { %v2765_v1 = vpop.eup %2764  ;;  %v1128_v5 = vadd.f32 1.0, %v2763_v61 }
 0x42f   :  { %v1134_v7 = vadd.f32 1.0, %v2765_v1  ;;  %v2767_v8 = vpop.eup %2766 }
 0x430   :  { %2770 = vrcp.f32 %v1128_v5  ;;  %v2769_v11 = vpop.eup %2768  ;;  %v1141_v20 = vadd.f32 1.0, %v2767_v8 }
 0x431   :  { %2772 = vrcp.f32 %v1134_v7 }
 0x432   :  { %2774 = vrcp.f32 %v1141_v20 }
 0x43a   :  { %v2771_v12 = vpop.eup %2770 }
 0x43b   :  { %v2773_v15 = vpop.eup %2772  ;;  %v1145_v17 = vmul.f32 %v2771_v12, %v2769_v11 }
 0x43c   :  { %v1144_v21 = vmul.f32 %v2773_v15, %v3543_v28  ;;  %v2775_v33 = vpop.eup %2774 }
 0x43e   :  { %v3585_v24 = vadd.f32 %v1145_v17, %v1144_v21 }
 0x440   :  { %2776 = vtanh.f32 %v3585_v24 }
 0x44a   :  { %v2777_v34 = vpop.eup %2776 }
 0x44b   :  { %v1148_v39 = vmul.f32 %v2777_v34, %v2775_v33 }
 0x44d   :  { %1221 = vmatmul.mubr.f32.vlgmr.msra.gmra.mrb[8].mxu0 %v1148_v39  ;;  %1292 = vmatmul.mubr.f32.vlgmr.msra.gmra.mrb[8].mxu1 %v1148_v39 }
 0x44e   :  { %2434 = vmatpush1.bf16.msra.mxu0 %v3115_v47  ;;  %2466 = vmatpush1.bf16.msra.mxu1 %v3124_v50 }
 0x44f   :  { %2436 = vmatprep.subr.bf16.mxu0 %v3133_v53  ;;  %2468 = vmatprep.subr.bf16.mxu1 %v3141_v56 }
 0x450   :  { %1397 = vmatprep.mubr.f32.mxu0 %v2846_v3  ;;  %1468 = vmatprep.mubr.f32.mxu1 %v2846_v3 }
 0x452   :  { %2438 = vmatpush1.bf16.msra.mxu0 %v3153_v60  ;;  %2470 = vmatpush1.bf16.msra.mxu1 %v3163_v63 }
 0x453   :  { %2440 = vmatprep.subr.bf16.mxu0 %v3173_v2  ;;  %2472 = vmatprep.subr.bf16.mxu1 %v3182_v6 }
 0x456   :  { %2442 = vmatpush1.bf16.msra.mxu0 %v3194_v10  ;;  %2474 = vmatpush1.bf16.msra.mxu1 %v3204_v13 }
 0x457   :  { %2444 = vmatprep.subr.bf16.mxu0 %v3214_v16  ;;  %2476 = vmatprep.subr.bf16.mxu1 %v3223_v19 }
 0x45a   :  { %2446 = vmatpush1.bf16.msra.mxu0 %v3235_v23  ;;  %2478 = vmatpush1.bf16.msra.mxu1 %v3245_v26 }
 0x45b   :  { %2448 = vmatprep.subr.bf16.mxu0 %v3255_v29  ;;  %2480 = vmatprep.subr.bf16.mxu1 %v3264_v32 }
 0x45e   :  { %2450 = vmatpush1.bf16.msra.mxu0 %v3276_v36  ;;  %2482 = vmatpush1.bf16.msra.mxu1 %v3286_v40 }
 0x45f   :  { %2452 = vmatprep.subr.bf16.mxu0 %v3296_v44  ;;  %2484 = vmatprep.subr.bf16.mxu1 %v3305_v48 }
 0x462   :  { %2454 = vmatpush1.bf16.msra.mxu0 %v3317_v54  ;;  %2486 = vmatpush1.bf16.msra.mxu1 %v3327_v58 }
 0x463   :  { %2456 = vmatprep.subr.bf16.mxu0 %v3337_v62  ;;  %2488 = vmatprep.subr.bf16.mxu1 %v3346_v4 }
 0x466   :  { %2458 = vmatpush1.bf16.msra.mxu0 %v3358_v9  ;;  %2490 = vmatpush1.bf16.msra.mxu1 %v3368_v14 }
 0x467   :  { %2460 = vmatprep.subr.bf16.mxu0 %v3378_v18  ;;  %2492 = vmatprep.subr.bf16.mxu1 %v3387_v22 }
 0x46a   :  { %2462 = vmatpush1.bf16.msra.mxu0 %v3393_v25  ;;  %2494 = vmatpush1.bf16.msra.mxu1 %v3397_v27 }
 0x46b   :  { %2496 = vmatprep.subr.bf16.mxu0 %v3090_v38  ;;  %2528 = vmatprep.subr.bf16.mxu1 %v3098_v41 }
 0x520   :  { %v1222_v28 = vpop.f32.mrb[8].mxu0  ;;  %v1293_v30 = vpop.f32.mrb[8].mxu1 }
 0x521   :  { %v2655_v31 = vadd.f32 %v1222_v28, %v3447_v35  ;;  %v1224_v42 = vpop.f32.mrb[9].mxu0  ;;  %v1295_v43 = vpop.f32.mrb[9].mxu1  ;;  %v2671_v55 = vadd.f32 %v1293_v30, %v3456_v0 }
 0x522   :  { %v2656_v45 = vadd.f32 %v1224_v42, %v3449_v37  ;;  %v2672_v51 = vadd.f32 %v1295_v43, %v3453_v57 }
 0x523   :  { %v1981_v46 = vmul.f32 -1.442695, %v2655_v31 }
 0x524   :  { %v1982_v49 = vmul.f32 -1.442695, %v2656_v45  ;;  %v1983_v52 = vmul.f32 -1.442695, %v2672_v51 }
 0x525   :  { %2778 = vpow2.f32 %v1981_v46 }
 0x526   :  { %2780 = vpow2.f32 %v1982_v49 }
 0x527   :  { %2782 = vpow2.f32 %v1983_v52 }
 0x528   :  { %2784 = vtanh.f32 %v2671_v55 }
 0x52f   :  { %v2779_v59 = vpop.eup %2778 }
 0x530   :  { %v2781_v61 = vpop.eup %2780  ;;  %v1305_v1 = vadd.f32 1.0, %v2779_v59 }
 0x531   :  { %v1311_v5 = vadd.f32 1.0, %v2781_v61  ;;  %v2783_v7 = vpop.eup %2782 }
 0x532   :  { %2786 = vrcp.f32 %v1305_v1  ;;  %v2785_v8 = vpop.eup %2784  ;;  %v1318_v17 = vadd.f32 1.0, %v2783_v7 }
 0x533   :  { %2788 = vrcp.f32 %v1311_v5 }
 0x534   :  { %2790 = vrcp.f32 %v1318_v17 }
 0x53c   :  { %v2787_v11 = vpop.eup %2786 }
 0x53d   :  { %v2789_v12 = vpop.eup %2788  ;;  %v1322_v15 = vmul.f32 %v2787_v11, %v2785_v8 }
 0x53e   :  { %v1321_v20 = vmul.f32 %v2789_v12, %v3585_v24  ;;  %v2791_v33 = vpop.eup %2790 }
 0x540   :  { %v3627_v21 = vadd.f32 %v1322_v15, %v1321_v20 }
 0x542   :  { %2792 = vtanh.f32 %v3627_v21 }
 0x54c   :  { %v2793_v34 = vpop.eup %2792 }
 0x54d   :  { %v1325_v39 = vmul.f32 %v2793_v34, %v2791_v33  ;;  %v1860_v34 = vld [vmem:[%s3776_s4 + $0x18] sm:$0xff] }
 0x54f   :  { %1398 = vmatmul.mubr.f32.vlgmr.msra.gmra.mrb[10].mxu0 %v1325_v39  ;;  %1469 = vmatmul.mubr.f32.vlgmr.msra.gmra.mrb[10].mxu1 %v1325_v39 }
 0x550   :  { %2498 = vmatpush1.bf16.msra.mxu0 %v3115_v47  ;;  %2530 = vmatpush1.bf16.msra.mxu1 %v3124_v50 }
 0x551   :  { %2500 = vmatprep.subr.bf16.mxu0 %v3133_v53  ;;  %2532 = vmatprep.subr.bf16.mxu1 %v3141_v56 }
 0x552   :  { %1574 = vmatprep.mubr.f32.mxu0 %v2846_v3  ;;  %1645 = vmatprep.mubr.f32.mxu1 %v2846_v3 }
 0x554   :  { %2502 = vmatpush1.bf16.msra.mxu0 %v3153_v60  ;;  %2534 = vmatpush1.bf16.msra.mxu1 %v3163_v63 }
 0x555   :  { %2504 = vmatprep.subr.bf16.mxu0 %v3173_v2  ;;  %2536 = vmatprep.subr.bf16.mxu1 %v3182_v6 }
 0x558   :  { %2506 = vmatpush1.bf16.msra.mxu0 %v3194_v10  ;;  %2538 = vmatpush1.bf16.msra.mxu1 %v3204_v13 }
 0x559   :  { %2508 = vmatprep.subr.bf16.mxu0 %v3214_v16  ;;  %2540 = vmatprep.subr.bf16.mxu1 %v3223_v19 }
 0x55c   :  { %2510 = vmatpush1.bf16.msra.mxu0 %v3235_v23  ;;  %2542 = vmatpush1.bf16.msra.mxu1 %v3245_v26 }
 0x55d   :  { %2512 = vmatprep.subr.bf16.mxu0 %v3255_v29  ;;  %2544 = vmatprep.subr.bf16.mxu1 %v3264_v32 }
 0x560   :  { %2514 = vmatpush1.bf16.msra.mxu0 %v3276_v36  ;;  %2546 = vmatpush1.bf16.msra.mxu1 %v3286_v40 }
 0x561   :  { %2516 = vmatprep.subr.bf16.mxu0 %v3296_v44  ;;  %2548 = vmatprep.subr.bf16.mxu1 %v3305_v48 }
 0x564   :  { %2518 = vmatpush1.bf16.msra.mxu0 %v3317_v54  ;;  %2550 = vmatpush1.bf16.msra.mxu1 %v3327_v58 }
 0x565   :  { %2520 = vmatprep.subr.bf16.mxu0 %v3337_v62  ;;  %2552 = vmatprep.subr.bf16.mxu1 %v3346_v4 }
 0x568   :  { %2522 = vmatpush1.bf16.msra.mxu0 %v3358_v9  ;;  %2554 = vmatpush1.bf16.msra.mxu1 %v3368_v14 }
 0x569   :  { %2524 = vmatprep.subr.bf16.mxu0 %v3378_v18  ;;  %2556 = vmatprep.subr.bf16.mxu1 %v3387_v22 }
 0x56c   :  { %2526 = vmatpush1.bf16.msra.mxu0 %v3393_v25  ;;  %2558 = vmatpush1.bf16.msra.mxu1 %v3397_v27 }
 0x56d   :  { %2560 = vmatprep.subr.bf16.mxu0 %v3090_v38  ;;  %2592 = vmatprep.subr.bf16.mxu1 %v3098_v41 }
 0x622   :  { %v1399_v24 = vpop.f32.mrb[10].mxu0  ;;  %v1470_v28 = vpop.f32.mrb[10].mxu1 }
 0x623   :  { %v2657_v30 = vadd.f32 %v1399_v24, %v3447_v35  ;;  %v1401_v31 = vpop.f32.mrb[11].mxu0  ;;  %v1472_v42 = vpop.f32.mrb[11].mxu1  ;;  %v2673_v52 = vadd.f32 %v1470_v28, %v3456_v0  ;;  %v1861_v24 = vld [vmem:[%s3776_s4 + $0x20] sm:$0xff]  ;;  %v1862_v28 = vld [vmem:[%s3776_s4 + $0x28] sm:$0xff] }
 0x624   :  { %v2658_v43 = vadd.f32 %v1401_v31, %v3449_v37  ;;  %v2674_v49 = vadd.f32 %v1472_v42, %v3453_v57  ;;  %v1863_v31 = vld [vmem:[%s3776_s4 + $0x30] sm:$0xff]  ;;  %v1864_v42 = vld [vmem:[%s3776_s4 + $0x38] sm:$0xff] }
 0x625   :  { %v1984_v45 = vmul.f32 -1.442695, %v2657_v30  ;;  %v2630_v30 = vpack.c.bf16 %v1862_v28, %v1861_v24 }
 0x626   :  { %v1985_v46 = vmul.f32 -1.442695, %v2658_v43  ;;  %v1986_v51 = vmul.f32 -1.442695, %v2674_v49  ;;  %v2633_v43 = vpack.c.bf16 %v1864_v42, %v1863_v31 }
 0x627   :  { %2794 = vpow2.f32 %v1984_v45  ;;  %v1865_v45 = vld [vmem:[%s3776_s4 + $0x40] sm:$0xff] }
 0x628   :  { %2796 = vpow2.f32 %v1985_v46  ;;  %v1866_v46 = vld [vmem:[%s3776_s4 + $0x48] sm:$0xff] }
 0x629   :  { %2798 = vpow2.f32 %v1986_v51  ;;  %v2636_v49 = vpack.c.bf16 %v1866_v46, %v1865_v45  ;;  %v1867_v51 = vld [vmem:[%s3776_s4 + $0x50] sm:$0xff] }
 0x62a   :  { %2800 = vtanh.f32 %v2673_v52  ;;  %v1868_v52 = vld [vmem:[%s3776_s4 + $0x58] sm:$0xff] }
 0x631   :  { %v2795_v38 = vpop.eup %2794 }
 0x632   :  { %v2797_v55 = vpop.eup %2796  ;;  %v1482_v41 = vadd.f32 1.0, %v2795_v38  ;;  %v1869_v38 = vld [vmem:[%s3776_s4 + $0x60] sm:$0xff] }
 0x633   :  { %v1488_v59 = vadd.f32 1.0, %v2797_v55  ;;  %v2799_v61 = vpop.eup %2798  ;;  %v2639_v55 = vpack.c.bf16 %v1868_v52, %v1867_v51 }
 0x634   :  { %2802 = vrcp.f32 %v1482_v41  ;;  %v2801_v1 = vpop.eup %2800  ;;  %v1495_v11 = vadd.f32 1.0, %v2799_v61  ;;  %v1870_v41 = vld [vmem:[%s3776_s4 + $0x68] sm:$0xff]  ;;  %v1871_v61 = vld [vmem:[%s3776_s4 + $0x70] sm:$0xff] }
 0x635   :  { %2804 = vrcp.f32 %v1488_v59  ;;  %v2642_v59 = vpack.c.bf16 %v1870_v41, %v1869_v38 }
 0x636   :  { %2806 = vrcp.f32 %v1495_v11 }
 0x63e   :  { %v2803_v5 = vpop.eup %2802 }
 0x63f   :  { %v2805_v7 = vpop.eup %2804  ;;  %v1499_v8 = vmul.f32 %v2803_v5, %v2801_v1  ;;  %v1872_v1 = vld [vmem:[%s3776_s4 + $0x78] sm:$0xff] }
 0x640   :  { %v1498_v12 = vmul.f32 %v2805_v7, %v3627_v21  ;;  %v2807_v17 = vpop.eup %2806  ;;  %v1859_v21 = vld [vmem:[%s3776_s4 + $0x10] sm:$0xff]  ;;  %v2645_v5 = vpack.c.bf16 %v1872_v1, %v1871_v61  ;;  %v11_v7 = vstv %s3777_s5 }
 0x641   :  { %v2627_v39 = vpack.c.bf16 %v1860_v34, %v1859_v21  ;;  %12 = vst [vmem:[#allocation3] sm:$0x1] %v11_v7 }
 0x642   :  { %v3669_v15 = vadd.f32 %v1499_v8, %v1498_v12 }
 0x644   :  { %2808 = vtanh.f32 %v3669_v15 }
 0x64e   :  { %v2809_v20 = vpop.eup %2808 }
 0x64f   :  { %v1502_v33 = vmul.f32 %v2809_v20, %v2807_v17 }
 0x651   :  { %1575 = vmatmul.mubr.f32.vlgmr.msra.gmra.mrb[12].mxu0 %v1502_v33  ;;  %1646 = vmatmul.mubr.f32.vlgmr.msra.gmra.mrb[12].mxu1 %v1502_v33 }
 0x652   :  { %2562 = vmatpush1.bf16.msra.mxu0 %v3115_v47  ;;  %2594 = vmatpush1.bf16.msra.mxu1 %v3124_v50 }
 0x653   :  { %2564 = vmatprep.subr.bf16.mxu0 %v3133_v53  ;;  %2596 = vmatprep.subr.bf16.mxu1 %v3141_v56 }
 0x654   :  { %1751 = vmatprep.mubr.f32.mxu0 %v2846_v3  ;;  %1822 = vmatprep.mubr.f32.mxu1 %v2846_v3 }
 0x656   :  { %2566 = vmatpush1.bf16.msra.mxu0 %v3153_v60  ;;  %2598 = vmatpush1.bf16.msra.mxu1 %v3163_v63 }
 0x657   :  { %2568 = vmatprep.subr.bf16.mxu0 %v3173_v2  ;;  %2600 = vmatprep.subr.bf16.mxu1 %v3182_v6 }
 0x65a   :  { %2570 = vmatpush1.bf16.msra.mxu0 %v3194_v10  ;;  %2602 = vmatpush1.bf16.msra.mxu1 %v3204_v13 }
 0x65b   :  { %2572 = vmatprep.subr.bf16.mxu0 %v3214_v16  ;;  %2604 = vmatprep.subr.bf16.mxu1 %v3223_v19 }
 0x65e   :  { %2574 = vmatpush1.bf16.msra.mxu0 %v3235_v23  ;;  %2606 = vmatpush1.bf16.msra.mxu1 %v3245_v26 }
 0x65f   :  { %2576 = vmatprep.subr.bf16.mxu0 %v3255_v29  ;;  %2608 = vmatprep.subr.bf16.mxu1 %v3264_v32 }
 0x662   :  { %2578 = vmatpush1.bf16.msra.mxu0 %v3276_v36  ;;  %2610 = vmatpush1.bf16.msra.mxu1 %v3286_v40 }
 0x663   :  { %2580 = vmatprep.subr.bf16.mxu0 %v3296_v44  ;;  %2612 = vmatprep.subr.bf16.mxu1 %v3305_v48 }
 0x666   :  { %2582 = vmatpush1.bf16.msra.mxu0 %v3317_v54  ;;  %2614 = vmatpush1.bf16.msra.mxu1 %v3327_v58 }
 0x667   :  { %2584 = vmatprep.subr.bf16.mxu0 %v3337_v62  ;;  %2616 = vmatprep.subr.bf16.mxu1 %v3346_v4 }
 0x66a   :  { %2586 = vmatpush1.bf16.msra.mxu0 %v3358_v9  ;;  %2618 = vmatpush1.bf16.msra.mxu1 %v3368_v14 }
 0x66b   :  { %2588 = vmatprep.subr.bf16.mxu0 %v3378_v18  ;;  %2620 = vmatprep.subr.bf16.mxu1 %v3387_v22  ;;  %v1857_v18 = vld [vmem:[%s3776_s4] sm:$0xff]  ;;  %v1858_v22 = vld [vmem:[%s3776_s4 + $0x8] sm:$0xff] }
 0x66e   :  { %2590 = vmatpush1.bf16.msra.mxu0 %v3393_v25  ;;  %2622 = vmatpush1.bf16.msra.mxu1 %v3397_v27  ;;  %v2624_v25 = vpack.c.bf16 %v1858_v22, %v1857_v18  ;;  %v2847_v27 = vmov 0.0|0.0  }
 0x66f   :  { %2623 = vmatprep.subr.bf16.mxu0 %v2847_v27 }
 0x724   :  { %v1576_v47 = vpop.f32.mrb[12].mxu0  ;;  %v1647_v50 = vpop.f32.mrb[12].mxu1 }
 0x725   :  { %v2659_v53 = vadd.f32 %v1576_v47, %v3447_v35  ;;  %v1578_v56 = vpop.f32.mrb[13].mxu0  ;;  %v1649_v60 = vpop.f32.mrb[13].mxu1  ;;  %v2675_v16 = vadd.f32 %v1647_v50, %v3456_v0 }
 0x726   :  { %v2660_v63 = vadd.f32 %v1578_v56, %v3449_v37  ;;  %v2676_v10 = vadd.f32 %v1649_v60, %v3453_v57 }
 0x727   :  { %v1987_v2 = vmul.f32 -1.442695, %v2659_v53 }
 0x728   :  { %v1988_v6 = vmul.f32 -1.442695, %v2660_v63  ;;  %v1989_v13 = vmul.f32 -1.442695, %v2676_v10 }
 0x729   :  { %2810 = vpow2.f32 %v1987_v2 }
 0x72a   :  { %2812 = vpow2.f32 %v1988_v6 }
 0x72b   :  { %2814 = vpow2.f32 %v1989_v13 }
 0x72c   :  { %2816 = vtanh.f32 %v2675_v16 }
 0x733   :  { %v2811_v19 = vpop.eup %2810 }
 0x734   :  { %v2813_v23 = vpop.eup %2812  ;;  %v1659_v26 = vadd.f32 1.0, %v2811_v19 }
 0x735   :  { %v1665_v29 = vadd.f32 1.0, %v2813_v23  ;;  %v2815_v32 = vpop.eup %2814 }
 0x736   :  { %2818 = vrcp.f32 %v1659_v26  ;;  %v2817_v36 = vpop.eup %2816  ;;  %v1672_v54 = vadd.f32 1.0, %v2815_v32 }
 0x737   :  { %2820 = vrcp.f32 %v1665_v29  ;;  %v1993_v29 = vld [vmem:[#allocation3] ss:$0 sm:$0xff] }
 0x738   :  { %2822 = vrcp.f32 %v1672_v54 }
 0x740   :  { %v2819_v40 = vpop.eup %2818 }
 0x741   :  { %v2821_v44 = vpop.eup %2820  ;;  %v1676_v48 = vmul.f32 %v2819_v40, %v2817_v36 }
 0x742   :  { %v1675_v58 = vmul.f32 %v2821_v44, %v3669_v15  ;;  %v2823_v4 = vpop.eup %2822 }
 0x744   :  { %v3709_v62 = vadd.f32 %v1676_v48, %v1675_v58 }
 0x746   :  { %2824 = vtanh.f32 %v3709_v62 }
 0x750   :  { %v2825_v9 = vpop.eup %2824 }
 0x751   :  { %v1679_v14 = vmul.f32 %v2825_v9, %v2823_v4 }
 0x753   :  { %1752 = vmatmul.mubr.f32.vlgmr.msra.gmra.mrb[14].mxu0 %v1679_v14  ;;  %1823 = vmatmul.mubr.f32.vlgmr.msra.gmra.mrb[14].mxu1 %v1679_v14 }
 0x754   :  { %2625 = vmatpush3.bf16.msra.mxu0 %v2624_v25  ;;  %2044 = vmatprep.mubr.msk.f32.mxu0 %vm2848_vm0, %v2846_v3 }
 0x755   :  { %2626 = vmatprep.subr.bf16.mxu0 %v2847_v27 }
 0x758   :  { %2628 = vmatpush3.bf16.msra.mxu0 %v2627_v39 }
 0x759   :  { %2629 = vmatprep.subr.bf16.mxu0 %v2847_v27 }
 0x75c   :  { %2631 = vmatpush3.bf16.msra.mxu0 %v2630_v30 }
 0x75d   :  { %2632 = vmatprep.subr.bf16.mxu0 %v2847_v27 }
 0x760   :  { %2634 = vmatpush3.bf16.msra.mxu0 %v2633_v43 }
 0x761   :  { %2635 = vmatprep.subr.bf16.mxu0 %v2847_v27 }
 0x764   :  { %2637 = vmatpush3.bf16.msra.mxu0 %v2636_v49 }
 0x765   :  { %2638 = vmatprep.subr.bf16.mxu0 %v2847_v27 }
 0x768   :  { %2640 = vmatpush3.bf16.msra.mxu0 %v2639_v55 }
 0x769   :  { %2641 = vmatprep.subr.bf16.mxu0 %v2847_v27 }
 0x76c   :  { %2643 = vmatpush3.bf16.msra.mxu0 %v2642_v59 }
 0x76d   :  { %2644 = vmatprep.subr.bf16.mxu0 %v2847_v27 }
 0x770   :  { %2646 = vmatpush3.bf16.msra.mxu0 %v2645_v5 }
 0x826   :  { %v1753_v3 = vpop.f32.mrb[14].mxu0  ;;  %v1824_v8 = vpop.f32.mrb[14].mxu1 }
 0x827   :  { %v2661_v11 = vadd.f32 %v1753_v3, %v3447_v35  ;;  %v1755_v12 = vpop.f32.mrb[15].mxu0  ;;  %v1826_v15 = vpop.f32.mrb[15].mxu1  ;;  %v2677_v53 = vadd.f32 %v1824_v8, %v3456_v0 }
 0x828   :  { %v2662_v17 = vadd.f32 %v1755_v12, %v3449_v37  ;;  %v2678_v47 = vadd.f32 %v1826_v15, %v3453_v57 }
 0x829   :  { %v1990_v20 = vmul.f32 -1.442695, %v2661_v11 }
 0x82a   :  { %v1991_v33 = vmul.f32 -1.442695, %v2662_v17  ;;  %v1992_v50 = vmul.f32 -1.442695, %v2678_v47 }
 0x82b   :  { %2826 = vpow2.f32 %v1990_v20 }
 0x82c   :  { %2828 = vpow2.f32 %v1991_v33 }
 0x82d   :  { %2830 = vpow2.f32 %v1992_v50 }
 0x82e   :  { %2832 = vtanh.f32 %v2677_v53 }
 0x835   :  { %v2827_v56 = vpop.eup %2826 }
 0x836   :  { %v2829_v60 = vpop.eup %2828  ;;  %v1836_v63 = vadd.f32 1.0, %v2827_v56 }
 0x837   :  { %v1842_v2 = vadd.f32 1.0, %v2829_v60  ;;  %v2831_v35 = vpop.eup %2830 }
 0x838   :  { %2834 = vrcp.f32 %v1836_v63  ;;  %v2833_v6 = vpop.eup %2832  ;;  %v1849_v16 = vadd.f32 1.0, %v2831_v35 }
 0x839   :  { %2836 = vrcp.f32 %v1842_v2 }
 0x83a   :  { %2838 = vrcp.f32 %v1849_v16 }
 0x842   :  { %v2835_v37 = vpop.eup %2834 }
 0x843   :  { %v2837_v10 = vpop.eup %2836  ;;  %v1853_v13 = vmul.f32 %v2835_v37, %v2833_v6 }
 0x844   :  { %v1852_v19 = vmul.f32 %v2837_v10, %v3709_v62  ;;  %v2839_v0 = vpop.eup %2838 }
 0x846   :  { %v1854_v57 = vadd.f32 %v1853_v13, %v1852_v19 }
 0x848   :  { %2840 = vtanh.f32 %v1854_v57 }
 0x852   :  { %v2841_v23 = vpop.eup %2840 }
 0x853   :  { %v1856_v26 = vmul.f32 %v2841_v23, %v2839_v0 }
 0x855   :  { %2045 = vmatmul.mubr.f32.vlgmr.msra.gmra.mrb[16].mxu0 %v1856_v26 }
 0x928   :  { %v1946_v32 = vpop.f32.mrb[16].mxu0 }
 0x929   :  { %v1947_v36 = vadd.f32 %v1993_v29, %v1946_v32  ;;  %v2046_v40 = vpop.f32.mrb[17].mxu0 }
 0x92b   :  { %v1994_v44 = vmul.f32 -1.442695, %v1947_v36 }
 0x92d   :  { %2842 = vpow2.f32 %v1994_v44 }
 0x937   :  { %v2843_v48 = vpop.eup %2842 }
 0x938   :  { %v1953_v54 = vadd.f32 1.0, %v2843_v48 }
 0x93a   :  { %2844 = vrcp.f32 %v1953_v54 }
 0x944   :  { %v2845_v58 = vpop.eup %2844 }
 0x945   :  { %1957 = vst.msk [vmem:[%s3778_s6] sm:$0xff] %vm1956_vm1, %v2845_v58 }

</bundles_post_ra>
